<compile_context>
chip_gen: v6e
topology: v6e:2x2x1
jax: 0.10.0
libtpu: 0.0.40
codegen_flags: <defaults>
</compile_context>

<pallas_src>
import jax
import jax.numpy as jnp
from jax.experimental import pallas as pl
from jax.experimental.pallas import tpu as pltpu

NDF = 64
EPS = 1e-5
NEG_SLOPE = 0.2
# Pixel tiles (lane multiples).  2048 amortizes the ~0.35us/step grid overhead
# on v6e/v7x; VMEM stays ~2-3 MB/tile (fine on every generation incl. v7x).
# TODO(synk): v5e (single vst slot, no bf16 VPU) slightly prefers 1024.
_TILE_CANDIDATES = (2048, 1024, 512, 256, 128)


def _leaky_relu(x):
    return jnp.where(x >= 0, x, NEG_SLOPE * x)


def _choose_tile(p):
    """Largest tile (multiple of 128) that still yields >= 2 tiles after padding."""
    p128 = -(-p // 128) * 128
    for t in _TILE_CANDIDATES:
        if p128 >= 2 * t:
            return t
    return 128


def _conv1_lrelu(x_ref, w1_ref, b1_ref):
    """conv1 + bias + LeakyReLU on the VPU (K = c_in is tiny; keep off the MXU)."""
    c_in = x_ref.shape[0]
    if c_in <= 8:
        # h1[j, p] = b1[j] + sum_c w1[j, c] * x[c, p]   (broadcast FMAs)
        h1 = b1_ref[...] + w1_ref[:, 0:1] * x_ref[0:1, :]
        for c in range(1, c_in):                    # static unroll, c_in small
            h1 = h1 + w1_ref[:, c:c + 1] * x_ref[c:c + 1, :]
    else:
        # Fallback for wide inputs: bf16 MXU matmul with f32 accumulation.
        h1 = jnp.dot(w1_ref[...].astype(jnp.bfloat16),
                     x_ref[...].astype(jnp.bfloat16),
                     preferred_element_type=jnp.float32) + b1_ref[...]
    return _leaky_relu(h1)


# ---------------------------------------------------------------------------
# Pass 1: conv1 (VPU) -> LeakyReLU; accumulate sum(h1) and Gram(h1) per split.
# Layout: channels on sublanes, pixels on lanes.
#   x_ref: (c_in, TILE_P)  w1_ref: (c1, c_in)  b1_ref: (c1, 1)
#   sum_ref: (1, c1, 1)    gram_ref: (1, c1, c1)   (per-split partials,
#   resident across the inner "arbitrary" grid axis)
# ---------------------------------------------------------------------------
def _stats_kernel(x_ref, w1_ref, b1_ref, sum_ref, gram_ref):
    i = pl.program_id(1)

    @pl.when(i == 0)
    def _():
        sum_ref[...] = jnp.zeros_like(sum_ref)
        gram_ref[...] = jnp.zeros_like(gram_ref)

    h1 = _conv1_lrelu(x_ref, w1_ref, b1_ref)          # (c1, TILE_P) f32

    sum_ref[0] = sum_ref[0] + jnp.sum(h1, axis=1, keepdims=True)
    # f32 Gram: small MXU op (N = c1 = 64 output columns); keeping it f32
    # avoids bf16-amplified cancellation in the E[y^2] - mean^2 variance.
    gram_ref[0] = gram_ref[0] + jax.lax.dot_general(
        h1, h1, (((1,), (1,)), ((), ())), preferred_element_type=jnp.float32)


# ---------------------------------------------------------------------------
# Pass 2: recompute conv1 (VPU) -> LeakyReLU, then conv2 (bf16 MXU, BN scale
# folded into the weights) -> shift add + LeakyReLU (f32 epilogue) -> conv3
# (bf16 MXU).  Output block (1, TILE_P) is lane-dense.
# ---------------------------------------------------------------------------
def _forward_kernel(x_ref, w1_ref, b1_ref, w2s_ref, shift_ref, w3_ref, out_ref):
    h1 = _conv1_lrelu(x_ref, w1_ref, b1_ref)          # (c1, TILE_P) f32
    y2 = jnp.dot(w2s_ref[...], h1.astype(jnp.bfloat16),
                 preferred_element_type=jnp.float32)  # (c2, TILE_P) f32
    y = _leaky_relu(y2 + shift_ref[...])
    out_ref[...] = jnp.dot(w3_ref[...], y.astype(jnp.bfloat16),
                           preferred_element_type=jnp.float32)


def pixel_discriminator(x_nchw, params):
    """x_nchw: (N, C_in, H, W) float32 -> (N, 1, H, W) float32."""
    w1 = params["w1"]        # (ndf, c_in)   -- PyTorch (out_ch, in_ch) layout
    b1 = params["b1"]        # (ndf,)
    w2 = params["w2"]        # (2*ndf, ndf)
    gamma = params["gamma"]  # (2*ndf,)
    beta = params["beta"]    # (2*ndf,)
    w3 = params["w3"]        # (1, 2*ndf)

    n, c_in, h, w = x_nchw.shape
    c1 = w1.shape[0]
    c2 = w2.shape[0]
    p = n * h * w

    tile_p = _choose_tile(p)
    splits = 2 if p > tile_p else 1          # shard pass-1 reduction across TCs
    chunk = splits * tile_p
    padded_p = -(-p // chunk) * chunk        # pad to a whole (split x tile) grid
    num_tiles = padded_p // tile_p
    tiles_per_split = num_tiles // splits
    n_pad = padded_p - p

    # NCHW -> (C_in, P): pixels on the fast/lane axis; zero-pad the pixel axis.
    x_cp = jnp.transpose(x_nchw, (1, 0, 2, 3)).reshape(c_in, p)
    if n_pad:
        x_cp = jnp.pad(x_cp, ((0, 0), (0, n_pad)))
    b1_col = b1.reshape(c1, 1)

    # ---- pass 1: sum(h1) and Gram(h1) for BatchNorm batch statistics ------
    part_sum, part_gram = pl.pallas_call(
        _stats_kernel,
        out_shape=(
            jax.ShapeDtypeStruct((splits, c1, 1), jnp.float32),
            jax.ShapeDtypeStruct((splits, c1, c1), jnp.float32),
        ),
        grid_spec=pltpu.PrefetchScalarGridSpec(
            num_scalar_prefetch=0,
            grid=(splits, tiles_per_split),
            in_specs=[
                pl.BlockSpec((c_in, tile_p),
                             lambda s, i: (0, s * tiles_per_split + i)),
                pl.BlockSpec((c1, c_in), lambda s, i: (0, 0)),
                pl.BlockSpec((c1, 1), lambda s, i: (0, 0)),
            ],
            out_specs=(
                pl.BlockSpec((1, c1, 1), lambda s, i: (s, 0, 0)),
                pl.BlockSpec((1, c1, c1), lambda s, i: (s, 0, 0)),
            ),
        ),
        compiler_params=pltpu.CompilerParams(
            dimension_semantics=("parallel", "arbitrary")),
    )(x_cp, w1, b1_col)

    # Combine per-core partials; remove the zero-padded pixels' contribution
    # analytically (a zero x column gives h1 == leaky_relu(b1) exactly).
    sum_h1 = jnp.sum(part_sum, axis=0)[:, 0]            # (c1,)
    gram = jnp.sum(part_gram, axis=0)                    # (c1, c1)
    if n_pad:
        h1_pad = jnp.where(b1 >= 0, b1, NEG_SLOPE * b1)  # (c1,)
        sum_h1 = sum_h1 - n_pad * h1_pad
        gram = gram - n_pad * jnp.outer(h1_pad, h1_pad)

    # BatchNorm (training-mode batch stats, biased variance) derived from the
    # h1 moments:  mean = w2 @ E[h1],  E[y2^2] = diag(w2 G w2^T)/P.
    # Folded into conv2 weights (scale) and a per-channel shift.
    inv_p = 1.0 / float(p)
    mean = (w2 @ sum_h1) * inv_p                          # (c2,)
    e_sq = jnp.sum((w2 @ gram) * w2, axis=1) * inv_p      # diag(w2 G w2^T)/P
    var = jnp.maximum(e_sq - mean * mean, 0.0)
    inv_std = jax.lax.rsqrt(var + EPS)
    scale = gamma * inv_std
    shift = beta - mean * scale

    w2_scaled = (w2 * scale[:, None]).astype(jnp.bfloat16)   # BN scale folded
    w3_b = w3.astype(jnp.bfloat16)
    shift_col = shift.reshape(c2, 1)

    # ---- pass 2: conv1(VPU) -> conv2(bf16 MXU) -> BN shift+lrelu -> conv3 --
    out_flat = pl.pallas_call(
        _forward_kernel,
        out_shape=jax.ShapeDtypeStruct((1, padded_p), jnp.float32),
        grid_spec=pltpu.PrefetchScalarGridSpec(
            num_scalar_prefetch=0,
            grid=(num_tiles,),
            in_specs=[
                pl.BlockSpec((c_in, tile_p), lambda i: (0, i)),
                pl.BlockSpec((c1, c_in), lambda i: (0, 0)),
                pl.BlockSpec((c1, 1), lambda i: (0, 0)),
                pl.BlockSpec((c2, c1), lambda i: (0, 0)),
                pl.BlockSpec((c2, 1), lambda i: (0, 0)),
                pl.BlockSpec((1, c2), lambda i: (0, 0)),
            ],
            out_specs=pl.BlockSpec((1, tile_p), lambda i: (0, i)),
        ),
        compiler_params=pltpu.CompilerParams(
            dimension_semantics=("parallel",)),
    )(x_cp, w1, b1_col, w2_scaled, shift_col, w3_b)

    # (1, padded_P) -> drop pad pixels -> (N, 1, H, W)
    return out_flat[:, :p].reshape(n, h, w)[:, None, :, :]


def init_params(key, input_nc, ndf=NDF):
    """Deterministic synthetic parameters in PyTorch (out_ch, in_ch) layout."""
    k1, k2, k3, k4, k5, k6 = jax.random.split(key, 6)
    return {
        "w1": jax.random.normal(k1, (ndf, input_nc), jnp.float32) * 0.1,
        "b1": jax.random.normal(k2, (ndf,), jnp.float32) * 0.1,
        "w2": jax.random.normal(k3, (2 * ndf, ndf), jnp.float32) * 0.05,
        "gamma": 1.0 + 0.1 * jax.random.normal(k4, (2 * ndf,), jnp.float32),
        "beta": 0.1 * jax.random.normal(k5, (2 * ndf,), jnp.float32),
        "w3": jax.random.normal(k6, (1, 2 * ndf), jnp.float32) * 0.05,
    }


def _reference(x_nchw, params):
    """Pure-JAX f32 reference (PyTorch-style centered-variance BatchNorm)."""
    n, c, h, w = x_nchw.shape
    x = jnp.transpose(x_nchw, (0, 2, 3, 1)).reshape(-1, c)
    h1 = x @ params["w1"].T + params["b1"][None, :]
    h1 = jnp.where(h1 >= 0, h1, NEG_SLOPE * h1)
    y2 = h1 @ params["w2"].T
    mean = jnp.mean(y2, axis=0, keepdims=True)
    var = jnp.mean((y2 - mean) ** 2, axis=0, keepdims=True)
    y = (y2 - mean) * jax.lax.rsqrt(var + EPS) * params["gamma"][None, :] \
        + params["beta"][None, :]
    y = jnp.where(y >= 0, y, NEG_SLOPE * y)
    o = y @ params["w3"].T
    return jnp.transpose(o.reshape(n, h, w, 1), (0, 3, 1, 2))


if __name__ == "__main__":
    key = jax.random.PRNGKey(0)
    kx, kp = jax.random.split(key)

    N, C_IN, H, W = 2, 4, 16, 16
    x = jax.random.normal(kx, (N, C_IN, H, W), jnp.float32)
    params = init_params(kp, C_IN, NDF)

    out = jax.jit(pixel_discriminator)(x, params)
    out = jax.block_until_ready(out)

    assert out.shape == (N, 1, H, W), out.shape
    ref = _reference(x, params)
    # bf16 MXU operands in pass 2 loosen the tolerance vs the f32 reference.
    max_err = float(jnp.max(jnp.abs(out - ref)))
    assert jnp.allclose(out, ref, atol=3e-2, rtol=3e-2), max_err

    print("KERNEL_OK")
</pallas_src>

<mosaic_0001>
module attributes {stable_mosaic.version = 11 : i64} {
  func.func @_stats_kernel(%arg0: i32, %arg1: i32, %arg2: memref<4x256xf32, #tpu.memory_space<vmem>>, %arg3: memref<64x4xf32, #tpu.memory_space<vmem>>, %arg4: memref<64x1xf32, #tpu.memory_space<vmem>>, %arg5: memref<1x64x1xf32, #tpu.memory_space<vmem>>, %arg6: memref<1x64x64xf32, #tpu.memory_space<vmem>>) attributes {dimension_semantics = [#tpu.dimension_semantics<parallel>, #tpu.dimension_semantics<arbitrary>], iteration_bounds = array<i64: 2, 1>, scalar_prefetch = 0 : i64, scratch_operands = 0 : i64, tpu.core_type = #tpu.core_type<tc>, window_params = [{transform_indices = @transform_0, window_bounds = array<i64: 4, 256>}, {pipeline_mode = #tpu.pipeline_mode<synchronous>, transform_indices = @transform_1, window_bounds = array<i64: 64, 4>}, {pipeline_mode = #tpu.pipeline_mode<synchronous>, transform_indices = @transform_2, window_bounds = array<i64: 64, 1>}, {transform_indices = @transform_3, window_bounds = array<i64: 1, 64, 1>}, {transform_indices = @transform_4, window_bounds = array<i64: 1, 64, 64>}]} {
    %c0_i32 = arith.constant 0 : i32
    %0 = arith.cmpi eq, %arg1, %c0_i32 : i32
    %1 = arith.extui %0 : i1 to i32
    %c0_i32_0 = arith.constant 0 : i32
    %2 = arith.cmpi ne, %1, %c0_i32_0 : i32
    scf.if %2 {
      %cst_30 = arith.constant 0.000000e+00 : f32
      %49 = vector.broadcast %cst_30 : f32 to vector<1x64x1xf32>
      %c0_31 = arith.constant 0 : index
      %c0_32 = arith.constant 0 : index
      %c0_33 = arith.constant 0 : index
      %50 = vector.load %arg5[%c0_31, %c0_32, %c0_33] : memref<1x64x1xf32, #tpu.memory_space<vmem>>, vector<1x64x1xf32>
      tpu.vector_store %arg5[%c0_31, %c0_32, %c0_33], %49 {strides = array<i32>} : memref<1x64x1xf32, #tpu.memory_space<vmem>>, vector<1x64x1xf32>,
      %cst_34 = arith.constant 0.000000e+00 : f32
      %51 = vector.broadcast %cst_34 : f32 to vector<1x64x64xf32>
      %c0_35 = arith.constant 0 : index
      %c0_36 = arith.constant 0 : index
      %c0_37 = arith.constant 0 : index
      %52 = vector.load %arg6[%c0_35, %c0_36, %c0_37] : memref<1x64x64xf32, #tpu.memory_space<vmem>>, vector<1x64x64xf32>
      tpu.vector_store %arg6[%c0_35, %c0_36, %c0_37], %51 {strides = array<i32>} : memref<1x64x64xf32, #tpu.memory_space<vmem>>, vector<1x64x64xf32>,
    } else {
    }
    %c0 = arith.constant 0 : index
    %c0_1 = arith.constant 0 : index
    %3 = vector.load %arg4[%c0, %c0_1] : memref<64x1xf32, #tpu.memory_space<vmem>>, vector<64x1xf32>
    %c0_2 = arith.constant 0 : index
    %c0_3 = arith.constant 0 : index
    %4 = vector.load %arg3[%c0_2, %c0_3] : memref<64x4xf32, #tpu.memory_space<vmem>>, vector<64x1xf32>
    %c0_4 = arith.constant 0 : index
    %c0_5 = arith.constant 0 : index
    %5 = vector.load %arg2[%c0_4, %c0_5] : memref<4x256xf32, #tpu.memory_space<vmem>>, vector<1x256xf32>
    %6 = vector.broadcast %4 : vector<64x1xf32> to vector<64x256xf32>
    %7 = vector.broadcast %5 : vector<1x256xf32> to vector<64x256xf32>
    %8 = arith.mulf %6, %7 : vector<64x256xf32>
    %9 = vector.broadcast %3 : vector<64x1xf32> to vector<64x256xf32>
    %10 = arith.addf %9, %8 : vector<64x256xf32>
    %c0_6 = arith.constant 0 : index
    %c1 = arith.constant 1 : index
    %11 = vector.load %arg3[%c0_6, %c1] : memref<64x4xf32, #tpu.memory_space<vmem>>, vector<64x1xf32>
    %c1_7 = arith.constant 1 : index
    %c0_8 = arith.constant 0 : index
    %12 = vector.load %arg2[%c1_7, %c0_8] : memref<4x256xf32, #tpu.memory_space<vmem>>, vector<1x256xf32>
    %13 = vector.broadcast %11 : vector<64x1xf32> to vector<64x256xf32>
    %14 = vector.broadcast %12 : vector<1x256xf32> to vector<64x256xf32>
    %15 = arith.mulf %13, %14 : vector<64x256xf32>
    %16 = arith.addf %10, %15 : vector<64x256xf32>
    %c0_9 = arith.constant 0 : index
    %c2 = arith.constant 2 : index
    %17 = vector.load %arg3[%c0_9, %c2] : memref<64x4xf32, #tpu.memory_space<vmem>>, vector<64x1xf32>
    %c2_10 = arith.constant 2 : index
    %c0_11 = arith.constant 0 : index
    %18 = vector.load %arg2[%c2_10, %c0_11] : memref<4x256xf32, #tpu.memory_space<vmem>>, vector<1x256xf32>
    %19 = vector.broadcast %17 : vector<64x1xf32> to vector<64x256xf32>
    %20 = vector.broadcast %18 : vector<1x256xf32> to vector<64x256xf32>
    %21 = arith.mulf %19, %20 : vector<64x256xf32>
    %22 = arith.addf %16, %21 : vector<64x256xf32>
    %c0_12 = arith.constant 0 : index
    %c3 = arith.constant 3 : index
    %23 = vector.load %arg3[%c0_12, %c3] : memref<64x4xf32, #tpu.memory_space<vmem>>, vector<64x1xf32>
    %c3_13 = arith.constant 3 : index
    %c0_14 = arith.constant 0 : index
    %24 = vector.load %arg2[%c3_13, %c0_14] : memref<4x256xf32, #tpu.memory_space<vmem>>, vector<1x256xf32>
    %25 = vector.broadcast %23 : vector<64x1xf32> to vector<64x256xf32>
    %26 = vector.broadcast %24 : vector<1x256xf32> to vector<64x256xf32>
    %27 = arith.mulf %25, %26 : vector<64x256xf32>
    %28 = arith.addf %22, %27 : vector<64x256xf32>
    %cst = arith.constant 0.000000e+00 : f32
    %29 = vector.broadcast %cst : f32 to vector<64x256xf32>
    %30 = arith.cmpf oge, %28, %29 : vector<64x256xf32>
    %cst_15 = arith.constant 2.000000e-01 : f32
    %31 = vector.broadcast %cst_15 : f32 to vector<64x256xf32>
    %32 = arith.mulf %31, %28 : vector<64x256xf32>
    %33 = arith.select %30, %28, %32 : vector<64x256xi1>, vector<64x256xf32>
    %c0_16 = arith.constant 0 : index
    %c0_17 = arith.constant 0 : index
    %c0_18 = arith.constant 0 : index
    %34 = vector.load %arg5[%c0_16, %c0_17, %c0_18] : memref<1x64x1xf32, #tpu.memory_space<vmem>>, vector<1x64x1xf32>
    %35 = vector.shape_cast %34 : vector<1x64x1xf32> to vector<64x1xf32>
    %cst_19 = arith.constant dense<0.000000e+00> : vector<64xf32>
    %36 = vector.multi_reduction <add>, %33, %cst_19 [1] : vector<64x256xf32> to vector<64xf32>
    %37 = vector.shape_cast %36 : vector<64xf32> to vector<64x1xf32>
    %38 = arith.addf %35, %37 : vector<64x1xf32>
    %c0_20 = arith.constant 0 : index
    %c0_21 = arith.constant 0 : index
    %c0_22 = arith.constant 0 : index
    %39 = vector.load %arg5[%c0_20, %c0_21, %c0_22] : memref<1x64x1xf32, #tpu.memory_space<vmem>>, vector<1x64x1xf32>
    %40 = vector.shape_cast %39 : vector<1x64x1xf32> to vector<64x1xf32>
    %41 = vector.shape_cast %38 : vector<64x1xf32> to vector<1x64x1xf32>
    tpu.vector_store %arg5[%c0_20, %c0_21, %c0_22], %41 {strides = array<i32>} : memref<1x64x1xf32, #tpu.memory_space<vmem>>, vector<1x64x1xf32>,
    %c0_23 = arith.constant 0 : index
    %c0_24 = arith.constant 0 : index
    %c0_25 = arith.constant 0 : index
    %42 = vector.load %arg6[%c0_23, %c0_24, %c0_25] : memref<1x64x64xf32, #tpu.memory_space<vmem>>, vector<1x64x64xf32>
    %43 = vector.shape_cast %42 : vector<1x64x64xf32> to vector<64x64xf32>
    %cst_26 = arith.constant dense<0.000000e+00> : vector<64x64xf32>
    %44 = tpu.matmul %33, %33, %cst_26 {dimension_numbers = #tpu.dot_dimension_numbers<[1], [1], [0], [0], [0, 0, 1, 0], [], []>} : vector<64x256xf32>, vector<64x256xf32>, vector<64x64xf32> -> vector<64x64xf32>
    %45 = arith.addf %43, %44 : vector<64x64xf32>
    %c0_27 = arith.constant 0 : index
    %c0_28 = arith.constant 0 : index
    %c0_29 = arith.constant 0 : index
    %46 = vector.load %arg6[%c0_27, %c0_28, %c0_29] : memref<1x64x64xf32, #tpu.memory_space<vmem>>, vector<1x64x64xf32>
    %47 = vector.shape_cast %46 : vector<1x64x64xf32> to vector<64x64xf32>
    %48 = vector.shape_cast %45 : vector<64x64xf32> to vector<1x64x64xf32>
    tpu.vector_store %arg6[%c0_27, %c0_28, %c0_29], %48 {strides = array<i32>} : memref<1x64x64xf32, #tpu.memory_space<vmem>>, vector<1x64x64xf32>,
    return
  }
  func.func @transform_0(%arg0: i32, %arg1: i32) -> (i32, i32) {
    %c1_i32 = arith.constant 1 : i32
    %0 = arith.muli %arg0, %c1_i32 : i32
    %1 = arith.addi %0, %arg1 : i32
    %c0_i32 = arith.constant 0 : i32
    %c0_i32_0 = arith.constant 0 : i32
    return %c0_i32, %1 : i32, i32
  }
  func.func @transform_1(%arg0: i32, %arg1: i32) -> (i32, i32) {
    %c0_i32 = arith.constant 0 : i32
    %c0_i32_0 = arith.constant 0 : i32
    %c0_i32_1 = arith.constant 0 : i32
    return %c0_i32, %c0_i32_0 : i32, i32
  }
  func.func @transform_2(%arg0: i32, %arg1: i32) -> (i32, i32) {
    %c0_i32 = arith.constant 0 : i32
    %c0_i32_0 = arith.constant 0 : i32
    %c0_i32_1 = arith.constant 0 : i32
    return %c0_i32, %c0_i32_0 : i32, i32
  }
  func.func @transform_3(%arg0: i32, %arg1: i32) -> (i32, i32, i32) {
    %c0_i32 = arith.constant 0 : i32
    %c0_i32_0 = arith.constant 0 : i32
    %c0_i32_1 = arith.constant 0 : i32
    return %arg0, %c0_i32, %c0_i32_0 : i32, i32, i32
  }
  func.func @transform_4(%arg0: i32, %arg1: i32) -> (i32, i32, i32) {
    %c0_i32 = arith.constant 0 : i32
    %c0_i32_0 = arith.constant 0 : i32
    %c0_i32_1 = arith.constant 0 : i32
    return %arg0, %c0_i32, %c0_i32_0 : i32, i32, i32
  }
}

module attributes {stable_mosaic.version = 11 : i64} {
  func.func @_forward_kernel(%arg0: i32, %arg1: memref<4x256xf32, #tpu.memory_space<vmem>>, %arg2: memref<64x4xf32, #tpu.memory_space<vmem>>, %arg3: memref<64x1xf32, #tpu.memory_space<vmem>>, %arg4: memref<128x64xbf16, #tpu.memory_space<vmem>>, %arg5: memref<128x1xf32, #tpu.memory_space<vmem>>, %arg6: memref<1x128xbf16, #tpu.memory_space<vmem>>, %arg7: memref<1x256xf32, #tpu.memory_space<vmem>>) attributes {dimension_semantics = [#tpu.dimension_semantics<parallel>], iteration_bounds = array<i64: 2>, scalar_prefetch = 0 : i64, scratch_operands = 0 : i64, tpu.core_type = #tpu.core_type<tc>, window_params = [{transform_indices = @transform_0, window_bounds = array<i64: 4, 256>}, {pipeline_mode = #tpu.pipeline_mode<synchronous>, transform_indices = @transform_1, window_bounds = array<i64: 64, 4>}, {pipeline_mode = #tpu.pipeline_mode<synchronous>, transform_indices = @transform_2, window_bounds = array<i64: 64, 1>}, {pipeline_mode = #tpu.pipeline_mode<synchronous>, transform_indices = @transform_3, window_bounds = array<i64: 128, 64>}, {pipeline_mode = #tpu.pipeline_mode<synchronous>, transform_indices = @transform_4, window_bounds = array<i64: 128, 1>}, {pipeline_mode = #tpu.pipeline_mode<synchronous>, transform_indices = @transform_5, window_bounds = array<i64: 1, 128>}, {transform_indices = @transform_6, window_bounds = array<i64: 1, 256>}]} {
    %c0 = arith.constant 0 : index
    %c0_0 = arith.constant 0 : index
    %0 = vector.load %arg3[%c0, %c0_0] : memref<64x1xf32, #tpu.memory_space<vmem>>, vector<64x1xf32>
    %c0_1 = arith.constant 0 : index
    %c0_2 = arith.constant 0 : index
    %1 = vector.load %arg2[%c0_1, %c0_2] : memref<64x4xf32, #tpu.memory_space<vmem>>, vector<64x1xf32>
    %c0_3 = arith.constant 0 : index
    %c0_4 = arith.constant 0 : index
    %2 = vector.load %arg1[%c0_3, %c0_4] : memref<4x256xf32, #tpu.memory_space<vmem>>, vector<1x256xf32>
    %3 = vector.broadcast %1 : vector<64x1xf32> to vector<64x256xf32>
    %4 = vector.broadcast %2 : vector<1x256xf32> to vector<64x256xf32>
    %5 = arith.mulf %3, %4 : vector<64x256xf32>
    %6 = vector.broadcast %0 : vector<64x1xf32> to vector<64x256xf32>
    %7 = arith.addf %6, %5 : vector<64x256xf32>
    %c0_5 = arith.constant 0 : index
    %c1 = arith.constant 1 : index
    %8 = vector.load %arg2[%c0_5, %c1] : memref<64x4xf32, #tpu.memory_space<vmem>>, vector<64x1xf32>
    %c1_6 = arith.constant 1 : index
    %c0_7 = arith.constant 0 : index
    %9 = vector.load %arg1[%c1_6, %c0_7] : memref<4x256xf32, #tpu.memory_space<vmem>>, vector<1x256xf32>
    %10 = vector.broadcast %8 : vector<64x1xf32> to vector<64x256xf32>
    %11 = vector.broadcast %9 : vector<1x256xf32> to vector<64x256xf32>
    %12 = arith.mulf %10, %11 : vector<64x256xf32>
    %13 = arith.addf %7, %12 : vector<64x256xf32>
    %c0_8 = arith.constant 0 : index
    %c2 = arith.constant 2 : index
    %14 = vector.load %arg2[%c0_8, %c2] : memref<64x4xf32, #tpu.memory_space<vmem>>, vector<64x1xf32>
    %c2_9 = arith.constant 2 : index
    %c0_10 = arith.constant 0 : index
    %15 = vector.load %arg1[%c2_9, %c0_10] : memref<4x256xf32, #tpu.memory_space<vmem>>, vector<1x256xf32>
    %16 = vector.broadcast %14 : vector<64x1xf32> to vector<64x256xf32>
    %17 = vector.broadcast %15 : vector<1x256xf32> to vector<64x256xf32>
    %18 = arith.mulf %16, %17 : vector<64x256xf32>
    %19 = arith.addf %13, %18 : vector<64x256xf32>
    %c0_11 = arith.constant 0 : index
    %c3 = arith.constant 3 : index
    %20 = vector.load %arg2[%c0_11, %c3] : memref<64x4xf32, #tpu.memory_space<vmem>>, vector<64x1xf32>
    %c3_12 = arith.constant 3 : index
    %c0_13 = arith.constant 0 : index
    %21 = vector.load %arg1[%c3_12, %c0_13] : memref<4x256xf32, #tpu.memory_space<vmem>>, vector<1x256xf32>
    %22 = vector.broadcast %20 : vector<64x1xf32> to vector<64x256xf32>
    %23 = vector.broadcast %21 : vector<1x256xf32> to vector<64x256xf32>
    %24 = arith.mulf %22, %23 : vector<64x256xf32>
    %25 = arith.addf %19, %24 : vector<64x256xf32>
    %cst = arith.constant 0.000000e+00 : f32
    %26 = vector.broadcast %cst : f32 to vector<64x256xf32>
    %27 = arith.cmpf oge, %25, %26 : vector<64x256xf32>
    %cst_14 = arith.constant 2.000000e-01 : f32
    %28 = vector.broadcast %cst_14 : f32 to vector<64x256xf32>
    %29 = arith.mulf %28, %25 : vector<64x256xf32>
    %30 = arith.select %27, %25, %29 : vector<64x256xi1>, vector<64x256xf32>
    %c0_15 = arith.constant 0 : index
    %c0_16 = arith.constant 0 : index
    %31 = vector.load %arg4[%c0_15, %c0_16] : memref<128x64xbf16, #tpu.memory_space<vmem>>, vector<128x64xbf16>
    %32 = arith.truncf %30 : vector<64x256xf32> to vector<64x256xbf16>
    %cst_17 = arith.constant dense<0.000000e+00> : vector<128x256xf32>
    %33 = tpu.matmul %31, %32, %cst_17 {dimension_numbers = #tpu.dot_dimension_numbers<[1], [0], [0], [1], [0, 0, 1, 1], [], []>} : vector<128x64xbf16>, vector<64x256xbf16>, vector<128x256xf32> -> vector<128x256xf32>
    %c0_18 = arith.constant 0 : index
    %c0_19 = arith.constant 0 : index
    %34 = vector.load %arg5[%c0_18, %c0_19] : memref<128x1xf32, #tpu.memory_space<vmem>>, vector<128x1xf32>
    %35 = vector.broadcast %34 : vector<128x1xf32> to vector<128x256xf32>
    %36 = arith.addf %33, %35 : vector<128x256xf32>
    %cst_20 = arith.constant 0.000000e+00 : f32
    %37 = vector.broadcast %cst_20 : f32 to vector<128x256xf32>
    %38 = arith.cmpf oge, %36, %37 : vector<128x256xf32>
    %cst_21 = arith.constant 2.000000e-01 : f32
    %39 = vector.broadcast %cst_21 : f32 to vector<128x256xf32>
    %40 = arith.mulf %39, %36 : vector<128x256xf32>
    %41 = arith.select %38, %36, %40 : vector<128x256xi1>, vector<128x256xf32>
    %c0_22 = arith.constant 0 : index
    %c0_23 = arith.constant 0 : index
    %42 = vector.load %arg6[%c0_22, %c0_23] : memref<1x128xbf16, #tpu.memory_space<vmem>>, vector<1x128xbf16>
    %43 = arith.truncf %41 : vector<128x256xf32> to vector<128x256xbf16>
    %cst_24 = arith.constant dense<0.000000e+00> : vector<1x256xf32>
    %44 = tpu.matmul %42, %43, %cst_24 {dimension_numbers = #tpu.dot_dimension_numbers<[1], [0], [0], [1], [0, 0, 1, 1], [], []>} : vector<1x128xbf16>, vector<128x256xbf16>, vector<1x256xf32> -> vector<1x256xf32>
    %c0_25 = arith.constant 0 : index
    %c0_26 = arith.constant 0 : index
    %45 = vector.load %arg7[%c0_25, %c0_26] : memref<1x256xf32, #tpu.memory_space<vmem>>, vector<1x256xf32>
    tpu.vector_store %arg7[%c0_25, %c0_26], %44 {strides = array<i32>} : memref<1x256xf32, #tpu.memory_space<vmem>>, vector<1x256xf32>,
    return
  }
  func.func @transform_0(%arg0: i32) -> (i32, i32) {
    %c0_i32 = arith.constant 0 : i32
    %c0_i32_0 = arith.constant 0 : i32
    return %c0_i32, %arg0 : i32, i32
  }
  func.func @transform_1(%arg0: i32) -> (i32, i32) {
    %c0_i32 = arith.constant 0 : i32
    %c0_i32_0 = arith.constant 0 : i32
    %c0_i32_1 = arith.constant 0 : i32
    return %c0_i32, %c0_i32_0 : i32, i32
  }
  func.func @transform_2(%arg0: i32) -> (i32, i32) {
    %c0_i32 = arith.constant 0 : i32
    %c0_i32_0 = arith.constant 0 : i32
    %c0_i32_1 = arith.constant 0 : i32
    return %c0_i32, %c0_i32_0 : i32, i32
  }
  func.func @transform_3(%arg0: i32) -> (i32, i32) {
    %c0_i32 = arith.constant 0 : i32
    %c0_i32_0 = arith.constant 0 : i32
    %c0_i32_1 = arith.constant 0 : i32
    return %c0_i32, %c0_i32_0 : i32, i32
  }
  func.func @transform_4(%arg0: i32) -> (i32, i32) {
    %c0_i32 = arith.constant 0 : i32
    %c0_i32_0 = arith.constant 0 : i32
    %c0_i32_1 = arith.constant 0 : i32
    return %c0_i32, %c0_i32_0 : i32, i32
  }
  func.func @transform_5(%arg0: i32) -> (i32, i32) {
    %c0_i32 = arith.constant 0 : i32
    %c0_i32_0 = arith.constant 0 : i32
    %c0_i32_1 = arith.constant 0 : i32
    return %c0_i32, %c0_i32_0 : i32, i32
  }
  func.func @transform_6(%arg0: i32) -> (i32, i32) {
    %c0_i32 = arith.constant 0 : i32
    %c0_i32_0 = arith.constant 0 : i32
    return %c0_i32, %arg0 : i32, i32
  }
}

</mosaic_0001>

<bundles_post_ra>
// kernel: pixel_discriminator.2
= control target key start
LH: loop header
LB: loop body
LE: loop exit
PB: predicated region body
PF: predicated region fallthrough
CT: control target
= control target key end

     0   :  { %s1092_s15 = smov 0   ;;  %s1094_s16 = smov 0   ;;  %s1470_s0 = inlined_call_operand.vmem [shape: f32[4,512], index: 0, kind: input, shape index: {}]   ;;  %s1471_s1 = inlined_call_operand.vmem [shape: f32[64,4], index: 1, kind: input, shape index: {}]   ;;  %s1472_s2 = inlined_call_operand.vmem [shape: f32[64,1], index: 2, kind: input, shape index: {}]   ;;  %s1473_s3 = inlined_call_operand.vmem [shape: f32[2,64,1], index: 3, kind: output, shape index: {0}]   ;;  %s1474_s4 = inlined_call_operand.vmem [shape: f32[2,64,64], index: 4, kind: output, shape index: {1}]  }
   0x1   :  { %s1096_s17 = smov 0  }
   0x2 LB: > { %s27_s18 = sadd.s32 1, %s1056_s16  ;;  %p952_p0 = scmp.ge.s32.totalorder %s1060_s17, 1  ;;  %s1060_s17 = sphi %s1096_s17, %s15_s17   ;;  %s1056_s16 = sphi %s1094_s16, %s1476_s16   ;;  %s1052_s15 = sphi %s1092_s15, %s1475_s15  }
   0x3   : > { %p29_p1 = scmp.ge.s32.totalorder %s27_s18, 2  ;;  %p182_p2 = scmp.lt.s32.totalorder %s1060_s17, 3 }
   0x5   : > { %s1478_s18 = smov (%p29_p1, %s27_s18), 0  ;;  %p183_p3 = pnand %p952_p0, %p182_p2 }
   0x6   : > { %s953_s29 = sshll.u32 (!%p183_p3), %s1052_s15, 1  ;;  %p222_p5 = scmp.lt.s32.totalorder (!%p183_p3), %s1052_s15, 1 }
   0x7   : > { %186 = sbr.rel (%p183_p3) target bundleno = 472 (0x1d8), region = 32  ;;  %p216_p4 = scmp.lt.s32.totalorder (!%p183_p3), %s953_s29, 3 }
   0xc   : > { %v269_v0 = vld [vmem:[%s1471_s1 + $0x38] sm:$0xff]  ;;  %v1062_v1 = vmov 2   ;;  %v1063_v2 = vmov 1   ;;  %v268_v3 = vld [vmem:[%s1471_s1 + $0x30] sm:$0xff]  ;;  %v1064_v4 = vmov 3   ;;  %v1065_v5 = vmov 0  }
   0xd   : > { %1013 = vset.pattern.permute.xlu0 %v1062_v1  ;;  %1011 = vset.pattern.permute.xlu1 %v1063_v2  ;;  %v267_v6 = vld [vmem:[%s1471_s1 + $0x28] sm:$0xff]  ;;  %v260_v7 = vld [vmem:[%s1472_s2 + $0x30] sm:$0xff]  ;;  %v265_v8 = vld [vmem:[%s1471_s1 + $0x18] sm:$0xff]  ;;  %s1480_s29 = smov (!%p216_p4, %s953_s29), 3  ;;  %v312_v24 = vlaneseq  ;;  %s1482_s15 = smov (!%p222_p5, %s1052_s15), 1  ;;  %vm236_vm0 = vcmask 7168  }
   0xe   : > { %502 = vperm.xlu0 %1013, %v269_v0   ;;  %425 = vperm.xlu1 %1011, %v269_v0   ;;  %v261_v9 = vld [vmem:[%s1472_s2 + $0x38] sm:$0xff]  ;;  %v259_v10 = vld [vmem:[%s1472_s2 + $0x28] sm:$0xff]  ;;  %v266_v11 = vld [vmem:[%s1471_s1 + $0x20] sm:$0xff]  ;;  %s954_s30 = sshll.u32 %s1480_s29, 2  ;;  %s964_s8 = sshll.u32 %s1482_s15, 6  ;;  %v1066_v41 = vmov 0.0  }
   0xf   : > { %v258_v12 = vld [vmem:[%s1472_s2 + $0x20] sm:$0xff]  ;;  %v257_v13 = vld [vmem:[%s1472_s2 + $0x18] sm:$0xff]  ;;  %v264_v14 = vld [vmem:[%s1471_s1 + $0x10] sm:$0xff]  ;;  %v313_v27 = vshrl.u32 %v312_v24, 7  ;;  %s219_s7 = scalar_lea.vmem %s1470_s0, %s954_s30  ;;  %s1204_s11 = scalar_lea.vmem %s1473_s3, %s964_s8 }
  0x10   : > { %v256_v15 = vld [vmem:[%s1472_s2 + $0x10] sm:$0xff]  ;;  %v255_v16 = vld [vmem:[%s1472_s2 + $0x8] sm:$0xff]  ;;  %v262_v17 = vld [vmem:[%s1471_s1] sm:$0xff]  ;;  %238 = vst.msk [vmem:[%s1204_s11 + $0x8] sm:$0xff] %vm236_vm0, %v1066_v41  ;;  %s1387_s14 = scalar_lea.vmem %s1474_s4, %s964_s8 }
  0x11   : > { %v254_v18 = vld [vmem:[%s1472_s2] sm:$0xff]  ;;  %v263_v19 = vld [vmem:[%s1471_s1 + $0x8] sm:$0xff]  ;;  %v314_v29 = vsub.s32 0, %v313_v27  ;;  %v318_v30 = vsub.s32 1, %v313_v27  ;;  %237 = vst.msk [vmem:[%s1204_s11] sm:$0xff] %vm236_vm0, %v1066_v41  ;;  %239 = vst.msk [vmem:[%s1204_s11 + $0x10] sm:$0xff] %vm236_vm0, %v1066_v41 }
  0x12   : > { %1015 = vset.pattern.permute.xlu0 %v1064_v4  ;;  %1012 = vset.pattern.permute.xlu1 %v1065_v5  ;;  %v270_v31 = vld [vmem:[%s219_s7] ss:$4 sm:$0x3]  ;;  %v959_v33 = vld [vmem:[%s219_s7 + $0x1] ss:$4 sm:$0x3] }
  0x13   : > { %579 = vperm.xlu0 %1015, %v269_v0   ;;  %303 = vperm.xlu1 %1012, %v268_v3   ;;  %v960_v34 = vld [vmem:[%s219_s7 + $0x2] ss:$4 sm:$0x3]  ;;  %v1195_v35 = vrot.slane %v270_v31, %v314_v29  ;;  %v1197_v36 = vrot.slane %v270_v31, %v318_v30  ;;  %v1206_v37 = vrot.slane %v959_v33, %v314_v29  ;;  %v961_v39 = vld [vmem:[%s219_s7 + $0x3] ss:$4 sm:$0x3] }
  0x14   : > { %v1208_v38 = vrot.slane %v959_v33, %v318_v30  ;;  %240 = vst.msk [vmem:[%s1204_s11 + $0x18] sm:$0xff] %vm236_vm0, %v1066_v41  ;;  %241 = vst.msk [vmem:[%s1204_s11 + $0x20] sm:$0xff] %vm236_vm0, %v1066_v41  ;;  %v1234_v42 = vrot.slane %v960_v34, %v314_v29  ;;  %v1236_v43 = vrot.slane %v960_v34, %v318_v30 }
  0x15   : > { %242 = vst.msk [vmem:[%s1204_s11 + $0x28] sm:$0xff] %vm236_vm0, %v1066_v41  ;;  %243 = vst.msk [vmem:[%s1204_s11 + $0x30] sm:$0xff] %vm236_vm0, %v1066_v41  ;;  %v1240_v47 = vrot.slane %v961_v39, %v314_v29  ;;  %v1242_v48 = vrot.slane %v961_v39, %v318_v30 }
  0x16   : > { %244 = vst.msk [vmem:[%s1204_s11 + $0x38] sm:$0xff] %vm236_vm0, %v1066_v41 }
  0x17   : > { %571 = vperm.xlu0 %1015, %v267_v6   ;;  %370 = vperm.xlu1 %1012, %v260_v7  }
  0x1b   : > { %563 = vperm.xlu0 %1015, %v265_v8   ;;  %1014 = vset.pattern.permute.xlu1 %v1063_v2 }
  0x1c   : > { %421 = vperm.xlu1 %1014, %v268_v3  }
  0x1f   : > { %1028 = vset.pattern.permute.xlu0 %v1065_v5 }
  0x20   : > { %308 = vperm.xlu0 %1028, %v269_v0   ;;  %1016 = vset.pattern.permute.xlu1 %v1065_v5 }
  0x21   : > { %298 = vperm.xlu1 %1016, %v267_v6  }
  0x24   : > { %375 = vperm.xlu0 %1028, %v261_v9  }
  0x25   : > { %1017 = vset.pattern.permute.xlu1 %v1062_v1 }
  0x26   : > { %498 = vperm.xlu1 %1017, %v268_v3  }
  0x28   : > { %365 = vperm.xlu0 %1028, %v259_v10  }
  0x2a   : > { %1018 = vset.pattern.permute.xlu1 %v1063_v2 }
  0x2b   : > { %417 = vperm.xlu1 %1018, %v267_v6  }
  0x2c   : > { %293 = vperm.xlu0 %1028, %v266_v11  }
  0x2f   : > { %1019 = vset.pattern.permute.xlu1 %v1064_v4 }
  0x30   : > { %575 = vperm.xlu1 %1019, %v268_v3   ;;  %360 = vperm.xlu0 %1028, %v258_v12  }
  0x34   : > { %1020 = vset.pattern.permute.xlu1 %v1062_v1  ;;  %355 = vperm.xlu0 %1028, %v257_v13  }
  0x35   : > { %494 = vperm.xlu1 %1020, %v267_v6  }
  0x38   : > { %283 = vperm.xlu0 %1028, %v264_v14  }
  0x39   : > { %1021 = vset.pattern.permute.xlu1 %v1063_v2 }
  0x3a   : > { %413 = vperm.xlu1 %1021, %v266_v11  }
  0x3c   : > { %350 = vperm.xlu0 %1028, %v256_v15  }
  0x3e   : > { %1022 = vset.pattern.permute.xlu1 %v1065_v5 }
  0x3f   : > { %288 = vperm.xlu1 %1022, %v265_v8  }
  0x40   : > { %345 = vperm.xlu0 %1028, %v255_v16  }
  0x43   : > { %1023 = vset.pattern.permute.xlu1 %v1062_v1 }
  0x44   : > { %490 = vperm.xlu1 %1023, %v266_v11   ;;  %273 = vperm.xlu0 %1028, %v262_v17  }
  0x48   : > { %1024 = vset.pattern.permute.xlu1 %v1063_v2  ;;  %340 = vperm.xlu0 %1028, %v254_v18  }
  0x49   : > { %409 = vperm.xlu1 %1024, %v265_v8  }
  0x4c   : > { %1035 = vset.pattern.permute.xlu0 %v1064_v4 }
  0x4d   : > { %1025 = vset.pattern.permute.xlu1 %v1064_v4  ;;  %555 = vperm.xlu0 %1035, %v263_v19  }
  0x4e   : > { %567 = vperm.xlu1 %1025, %v266_v11  }
  0x52   : > { %1026 = vset.pattern.permute.xlu1 %v1062_v1 }
  0x53   : > { %486 = vperm.xlu1 %1026, %v265_v8  }
  0x57   : > { %1027 = vset.pattern.permute.xlu1 %v1063_v2 }
  0x58   : > { %405 = vperm.xlu1 %1027, %v264_v14  }
  0x5c   : > { %1029 = vset.pattern.permute.xlu1 %v1065_v5 }
  0x5d   : > { %278 = vperm.xlu1 %1029, %v263_v19  }
  0x61   : > { %1030 = vset.pattern.permute.xlu1 %v1062_v1 }
  0x62   : > { %482 = vperm.xlu1 %1030, %v264_v14  }
  0x66   : > { %1031 = vset.pattern.permute.xlu1 %v1063_v2 }
  0x67   : > { %401 = vperm.xlu1 %1031, %v263_v19  }
  0x6b   : > { %1032 = vset.pattern.permute.xlu1 %v1064_v4 }
  0x6c   : > { %559 = vperm.xlu1 %1032, %v264_v14  }
  0x70   : > { %1033 = vset.pattern.permute.xlu1 %v1062_v1 }
  0x71   : > { %478 = vperm.xlu1 %1033, %v263_v19  }
  0x75   : > { %1034 = vset.pattern.permute.xlu1 %v1063_v2 }
  0x76   : > { %397 = vperm.xlu1 %1034, %v262_v17  }
  0x7a   : > { %1036 = vset.pattern.permute.xlu1 %v1062_v1 }
  0x7b   : > { %474 = vperm.xlu1 %1036, %v262_v17  }
  0x7f   : > { %1037 = vset.pattern.permute.xlu1 %v1064_v4 }
  0x80   : > { %551 = vperm.xlu1 %1037, %v262_v17  }
  0x89   : > { %v426_v20 = vpop.permute.xlu1 %425  ;;  %v503_v21 = vpop.permute.xlu0 %502 }
  0x8a   : > { %v453_v49 = vmul.f32 %v1206_v37, %v426_v20  ;;  %v454_v50 = vmul.f32 %v1208_v38, %v426_v20  ;;  %v530_v52 = vmul.f32 %v1234_v42, %v503_v21  ;;  %v531_v53 = vmul.f32 %v1236_v43, %v503_v21 }
  0x8e   : > { %v304_v22 = vpop.permute.xlu1 %303  ;;  %v580_v23 = vpop.permute.xlu0 %579 }
  0x8f   : > { %v607_v57 = vmul.f32 %v1240_v47, %v580_v23  ;;  %v608_v58 = vmul.f32 %v1242_v48, %v580_v23  ;;  %v334_v63 = vmul.f32 %v1195_v35, %v304_v22  ;;  %v335_v0 = vmul.f32 %v1197_v36, %v304_v22 }
  0x92   : > { %v371_v25 = vpop.permute.xlu1 %370  ;;  %v1183_v26 = vpop.permute.xlu0 %571 }
  0x93   : > { %v390_v6 = vadd.f32 %v371_v25, %v334_v63  ;;  %v391_v7 = vadd.f32 %v371_v25, %v335_v0  ;;  %v603_v30 = vmul.f32 %v1240_v47, %v1183_v26  ;;  %v604_v31 = vmul.f32 %v1242_v48, %v1183_v26 }
  0x96   : > { %v1189_v28 = vpop.permute.xlu0 %563 }
  0x97   : > { %v422_v32 = vpop.permute.xlu1 %421 }
  0x98   : > { %v451_v1 = vmul.f32 %v1206_v37, %v422_v32  ;;  %v452_v2 = vmul.f32 %v1208_v38, %v422_v32 }
  0x9a   : > { %v467_v12 = vadd.f32 %v451_v1, %v390_v6  ;;  %v468_v13 = vadd.f32 %v452_v2, %v391_v7 }
  0x9b   : > { %v309_v40 = vpop.permute.xlu0 %308 }
  0x9c   : > { %v336_v44 = vmul.f32 %v1195_v35, %v309_v40  ;;  %v337_v45 = vmul.f32 %v1197_v36, %v309_v40  ;;  %v299_v46 = vpop.permute.xlu1 %298 }
  0x9d   : > { %v332_v22 = vmul.f32 %v1195_v35, %v299_v46  ;;  %v333_v23 = vmul.f32 %v1197_v36, %v299_v46 }
  0x9f   : > { %v376_v51 = vpop.permute.xlu0 %375 }
  0xa0   : > { %v392_v54 = vadd.f32 %v376_v51, %v336_v44  ;;  %v393_v55 = vadd.f32 %v376_v51, %v337_v45 }
  0xa1   : > { %v499_v56 = vpop.permute.xlu1 %498 }
  0xa2   : > { %v469_v59 = vadd.f32 %v453_v49, %v392_v54  ;;  %v470_v60 = vadd.f32 %v454_v50, %v393_v55  ;;  %v528_v8 = vmul.f32 %v1234_v42, %v499_v56  ;;  %v529_v9 = vmul.f32 %v1236_v43, %v499_v56 }
  0xa3   : > { %v366_v19 = vpop.permute.xlu0 %365 }
  0xa4   : > { %v546_v61 = vadd.f32 %v530_v52, %v469_v59  ;;  %v547_v62 = vadd.f32 %v531_v53, %v470_v60  ;;  %v544_v16 = vadd.f32 %v528_v8, %v467_v12  ;;  %v545_v18 = vadd.f32 %v529_v9, %v468_v13 }
  0xa5   : > { %v388_v32 = vadd.f32 %v366_v19, %v332_v22  ;;  %v389_v33 = vadd.f32 %v366_v19, %v333_v23 }
  0xa6   : > { %v623_v3 = vadd.f32 %v607_v57, %v546_v61  ;;  %v624_v4 = vadd.f32 %v608_v58, %v547_v62  ;;  %v418_v5 = vpop.permute.xlu1 %417 }
  0xa7   : > { %v449_v24 = vmul.f32 %v1206_v37, %v418_v5  ;;  %v450_v25 = vmul.f32 %v1208_v38, %v418_v5  ;;  %v294_v60 = vpop.permute.xlu0 %293 }
  0xa8   : > { %vm640_vm1 = vcmp.ge.f32.partialorder %v624_v4, 0.0  ;;  %v656_v10 = vmul.f32 0.2, %v624_v4  ;;  %vm639_vm2 = vcmp.ge.f32.partialorder %v623_v3, 0.0  ;;  %v655_v11 = vmul.f32 0.2, %v623_v3 }
  0xa9   : > { %v465_v44 = vadd.f32 %v449_v24, %v388_v32  ;;  %v466_v45 = vadd.f32 %v450_v25, %v389_v33  ;;  %v330_v63 = vmul.f32 %v1195_v35, %v294_v60  ;;  %v331_v0 = vmul.f32 %v1197_v36, %v294_v60 }
  0xaa   : > { %v1256_v14 = vsel %vm640_vm1, %v624_v4, %v656_v10  ;;  %v1258_v15 = vsel %vm639_vm2, %v623_v3, %v655_v11  ;;  %vm245_vm2 = vcmask 523264  }
  0xab   : > { %v576_v17 = vpop.permute.xlu1 %575  ;;  %746 = vmatprep.subr.mxu0 %v1256_v14  ;;  %966 = vmatprep.subr.mxu1 %v1256_v14  ;;  %v361_v1 = vpop.permute.xlu0 %360  ;;  %246 = vst.msk [vmem:[%s1387_s14] sm:$0xff] %vm245_vm2, %v1066_v41  ;;  %247 = vst.msk [vmem:[%s1387_s14 + $0x8] sm:$0xff] %vm245_vm2, %v1066_v41 }
  0xac   : > { %v605_v20 = vmul.f32 %v1240_v47, %v576_v17  ;;  %v606_v21 = vmul.f32 %v1242_v48, %v576_v17  ;;  %747 = vmatpush1.xpose.msra.mxu0 %v1258_v15  ;;  %974 = vmatpush1.xpose.msra.mxu1 %v1258_v15  ;;  %v386_v2 = vadd.f32 %v361_v1, %v330_v63 }
  0xad   : > { %v387_v3 = vadd.f32 %v361_v1, %v331_v0  ;;  %248 = vst.msk [vmem:[%s1387_s14 + $0x10] sm:$0xff] %vm245_vm2, %v1066_v41  ;;  %249 = vst.msk [vmem:[%s1387_s14 + $0x18] sm:$0xff] %vm245_vm2, %v1066_v41 }
  0xae   : > { %v621_v27 = vadd.f32 %v605_v20, %v544_v16  ;;  %v622_v29 = vadd.f32 %v606_v21, %v545_v18  ;;  %250 = vst.msk [vmem:[%s1387_s14 + $0x20] sm:$0xff] %vm245_vm2, %v1066_v41  ;;  %251 = vst.msk [vmem:[%s1387_s14 + $0x28] sm:$0xff] %vm245_vm2, %v1066_v41 }
  0xaf   : > { %v356_v7 = vpop.permute.xlu0 %355  ;;  %252 = vst.msk [vmem:[%s1387_s14 + $0x30] sm:$0xff] %vm245_vm2, %v1066_v41  ;;  %253 = vst.msk [vmem:[%s1387_s14 + $0x38] sm:$0xff] %vm245_vm2, %v1066_v41  ;;  %v673_v41 = vld [vmem:[%s1204_s11] sm:$0xff] }
  0xb0   : > { %v495_v34 = vpop.permute.xlu1 %494  ;;  %vm638_vm3 = vcmp.ge.f32.partialorder %v622_v29, 0.0  ;;  %v654_v39 = vmul.f32 0.2, %v622_v29  ;;  %vm637_vm4 = vcmp.ge.f32.partialorder %v621_v27, 0.0  ;;  %v653_v40 = vmul.f32 0.2, %v621_v27 }
  0xb1   : > { %v526_v46 = vmul.f32 %v1234_v42, %v495_v34  ;;  %v527_v49 = vmul.f32 %v1236_v43, %v495_v34 }
  0xb2   : > { %v1276_v50 = vsel %vm638_vm3, %v622_v29, %v654_v39  ;;  %v1278_v51 = vsel %vm637_vm4, %v621_v27, %v653_v40 }
  0xb3   : > { %v542_v52 = vadd.f32 %v526_v46, %v465_v44  ;;  %v543_v53 = vadd.f32 %v527_v49, %v466_v45  ;;  %748 = vmatprep.subr.mxu0 %v1276_v50  ;;  %967 = vmatprep.subr.mxu1 %v1276_v50  ;;  %v284_v23 = vpop.permute.xlu0 %283  ;;  %v599_v44 = vmul.f32 %v1240_v47, %v1189_v28 }
  0xb4   : > { %749 = vmatpush1.xpose.msra.mxu0 %v1278_v51  ;;  %975 = vmatpush1.xpose.msra.mxu1 %v1278_v51  ;;  %v600_v49 = vmul.f32 %v1242_v48, %v1189_v28 }
  0xb5   : > { %v619_v26 = vadd.f32 %v603_v30, %v542_v52  ;;  %v620_v54 = vadd.f32 %v604_v31, %v543_v53  ;;  %v414_v55 = vpop.permute.xlu1 %413 }
  0xb6   : > { %v447_v4 = vmul.f32 %v1206_v37, %v414_v55  ;;  %v448_v5 = vmul.f32 %v1208_v38, %v414_v55 }
  0xb7   : > { %vm636_vm5 = vcmp.ge.f32.partialorder %v620_v54, 0.0  ;;  %v652_v56 = vmul.f32 0.2, %v620_v54  ;;  %vm635_vm6 = vcmp.ge.f32.partialorder %v619_v26, 0.0  ;;  %v651_v57 = vmul.f32 0.2, %v619_v26 }
  0xb8   : > { %v463_v10 = vadd.f32 %v447_v4, %v386_v2  ;;  %v464_v11 = vadd.f32 %v448_v5, %v387_v3  ;;  %v326_v2 = vmul.f32 %v1195_v35, %v284_v23  ;;  %v327_v3 = vmul.f32 %v1197_v36, %v284_v23 }
  0xb9   : > { %v1284_v58 = vsel %vm636_vm5, %v620_v54, %v652_v56  ;;  %v1286_v59 = vsel %vm635_vm6, %v619_v26, %v651_v57  ;;  %v351_v26 = vpop.permute.xlu0 %350 }
  0xba   : > { %v289_v61 = vpop.permute.xlu1 %288  ;;  %750 = vmatprep.subr.mxu0 %v1284_v58  ;;  %968 = vmatprep.subr.mxu1 %v1284_v58 }
  0xbb   : > { %751 = vmatpush1.xpose.msra.mxu0 %v1286_v59  ;;  %976 = vmatpush1.xpose.msra.mxu1 %v1286_v59  ;;  %v328_v12 = vmul.f32 %v1195_v35, %v289_v61  ;;  %v329_v13 = vmul.f32 %v1197_v36, %v289_v61 }
  0xbd   : > { %v384_v27 = vadd.f32 %v356_v7, %v328_v12  ;;  %v385_v29 = vadd.f32 %v356_v7, %v329_v13  ;;  %v382_v7 = vadd.f32 %v351_v26, %v326_v2 }
  0xbf   : > { %v491_v62 = vpop.permute.xlu1 %490 }
  0xc0   : > { %v524_v8 = vmul.f32 %v1234_v42, %v491_v62  ;;  %v525_v9 = vmul.f32 %v1236_v43, %v491_v62  ;;  %v346_v62 = vpop.permute.xlu0 %345 }
  0xc2   : > { %v540_v17 = vadd.f32 %v524_v8, %v463_v10  ;;  %v541_v18 = vadd.f32 %v525_v9, %v464_v11  ;;  %v383_v8 = vadd.f32 %v351_v26, %v327_v3 }
  0xc4   : > { %v410_v6 = vpop.permute.xlu1 %409  ;;  %v274_v1 = vpop.permute.xlu0 %273 }
  0xc5   : > { %v445_v21 = vmul.f32 %v1206_v37, %v410_v6  ;;  %v446_v22 = vmul.f32 %v1208_v38, %v410_v6  ;;  %v322_v2 = vmul.f32 %v1195_v35, %v274_v1  ;;  %v323_v3 = vmul.f32 %v1197_v36, %v274_v1 }
  0xc7   : > { %v461_v33 = vadd.f32 %v445_v21, %v384_v27  ;;  %v462_v34 = vadd.f32 %v446_v22, %v385_v29 }
  0xc8   : > { %v341_v9 = vpop.permute.xlu0 %340 }
  0xc9   : > { %v568_v16 = vpop.permute.xlu1 %567 }
  0xca   : > { %v601_v19 = vmul.f32 %v1240_v47, %v568_v16  ;;  %v602_v20 = vmul.f32 %v1242_v48, %v568_v16 }
  0xcc   : > { %v617_v24 = vadd.f32 %v601_v19, %v540_v17  ;;  %v618_v25 = vadd.f32 %v602_v20, %v541_v18  ;;  %v556_v23 = vpop.permute.xlu0 %555 }
  0xce   : > { %v487_v30 = vpop.permute.xlu1 %486  ;;  %vm634_vm7 = vcmp.ge.f32.partialorder %v618_v25, 0.0  ;;  %v650_v31 = vmul.f32 0.2, %v618_v25  ;;  %vm633_vm8 = vcmp.ge.f32.partialorder %v617_v24, 0.0  ;;  %v649_v32 = vmul.f32 0.2, %v617_v24 }
  0xcf   : > { %v522_v39 = vmul.f32 %v1234_v42, %v487_v30  ;;  %v523_v40 = vmul.f32 %v1236_v43, %v487_v30 }
  0xd0   : > { %v1308_v45 = vsel %vm634_vm7, %v618_v25, %v650_v31  ;;  %v1310_v46 = vsel %vm633_vm8, %v617_v24, %v649_v32  ;;  %v595_v32 = vmul.f32 %v1240_v47, %v556_v23 }
  0xd1   : > { %v538_v52 = vadd.f32 %v522_v39, %v461_v33  ;;  %v539_v53 = vadd.f32 %v523_v40, %v462_v34  ;;  %752 = vmatprep.subr.mxu0 %v1308_v45  ;;  %969 = vmatprep.subr.mxu1 %v1308_v45  ;;  %v596_v33 = vmul.f32 %v1242_v48, %v556_v23 }
  0xd2   : > { %814 = vmatprep.mubr.f32.mxu1 %v1308_v45  ;;  %753 = vmatpush1.xpose.msra.mxu0 %v1310_v46 }
  0xd3   : > { %v615_v54 = vadd.f32 %v599_v44, %v538_v52  ;;  %v616_v55 = vadd.f32 %v600_v49, %v539_v53  ;;  %977 = vmatpush1.xpose.msra.mxu1 %v1310_v46  ;;  %v406_v56 = vpop.permute.xlu1 %405 }
  0xd4   : > { %v443_v4 = vmul.f32 %v1206_v37, %v406_v56  ;;  %v444_v5 = vmul.f32 %v1208_v38, %v406_v56 }
  0xd5   : > { %vm632_vm9 = vcmp.ge.f32.partialorder %v616_v55, 0.0  ;;  %v648_v57 = vmul.f32 0.2, %v616_v55  ;;  %vm631_vm10 = vcmp.ge.f32.partialorder %v615_v54, 0.0  ;;  %v647_v28 = vmul.f32 0.2, %v615_v54 }
  0xd6   : > { %v459_v12 = vadd.f32 %v443_v4, %v382_v7  ;;  %v460_v13 = vadd.f32 %v444_v5, %v383_v8 }
  0xd7   : > { %v1319_v60 = vsel %vm632_vm9, %v616_v55, %v648_v57  ;;  %v1321_v61 = vsel %vm631_vm10, %v615_v54, %v647_v28 }
  0xd8   : > { %v279_v63 = vpop.permute.xlu1 %278  ;;  %754 = vmatprep.subr.mxu0 %v1319_v60  ;;  %970 = vmatprep.subr.mxu1 %v1319_v60 }
  0xd9   : > { %755 = vmatpush1.xpose.msra.mxu0 %v1321_v61  ;;  %978 = vmatpush1.xpose.msra.mxu1 %v1321_v61  ;;  %v324_v16 = vmul.f32 %v1195_v35, %v279_v63  ;;  %v325_v17 = vmul.f32 %v1197_v36, %v279_v63 }
  0xdb   : > { %v380_v30 = vadd.f32 %v346_v62, %v324_v16  ;;  %v381_v31 = vadd.f32 %v346_v62, %v325_v17 }
  0xdd   : > { %v483_v0 = vpop.permute.xlu1 %482 }
  0xde   : > { %v520_v10 = vmul.f32 %v1234_v42, %v483_v0  ;;  %v521_v11 = vmul.f32 %v1236_v43, %v483_v0 }
  0xe0   : > { %v536_v19 = vadd.f32 %v520_v10, %v459_v12  ;;  %v537_v20 = vadd.f32 %v521_v11, %v460_v13  ;;  %v378_v11 = vadd.f32 %v341_v9, %v322_v2  ;;  %v379_v12 = vadd.f32 %v341_v9, %v323_v3  ;;  %v727_v3 = vld [vmem:[%s1387_s14 + $0x28] sm:$0xff] }
  0xe2   : > { %v402_v6 = vpop.permute.xlu1 %401 }
  0xe3   : > { %v441_v24 = vmul.f32 %v1206_v37, %v402_v6  ;;  %v442_v25 = vmul.f32 %v1208_v38, %v402_v6 }
  0xe5   : > { %v457_v44 = vadd.f32 %v441_v24, %v380_v30  ;;  %v458_v49 = vadd.f32 %v442_v25, %v381_v31  ;;  %v702_v24 = vadd.f32 %v1256_v14, %v1258_v15  ;;  %v675_v30 = vld [vmem:[%s1204_s11 + $0x10] sm:$0xff] }
  0xe7   : > { %v560_v18 = vpop.permute.xlu1 %559 }
  0xe8   : > { %v597_v21 = vmul.f32 %v1240_v47, %v560_v18  ;;  %v598_v22 = vmul.f32 %v1242_v48, %v560_v18 }
  0xea   : > { %v613_v27 = vadd.f32 %v597_v21, %v536_v19  ;;  %v614_v29 = vadd.f32 %v598_v22, %v537_v20 }
  0xec   : > { %v479_v34 = vpop.permute.xlu1 %478  ;;  %vm630_vm11 = vcmp.ge.f32.partialorder %v614_v29, 0.0  ;;  %v646_v39 = vmul.f32 0.2, %v614_v29  ;;  %vm629_vm12 = vcmp.ge.f32.partialorder %v613_v27, 0.0  ;;  %v645_v40 = vmul.f32 0.2, %v613_v27 }
  0xed   : > { %v518_v52 = vmul.f32 %v1234_v42, %v479_v34  ;;  %v519_v53 = vmul.f32 %v1236_v43, %v479_v34 }
  0xee   : > { %v1343_v26 = vsel %vm630_vm11, %v614_v29, %v646_v39  ;;  %v1345_v54 = vsel %vm629_vm12, %v613_v27, %v645_v40  ;;  %v678_v40 = vld [vmem:[%s1204_s11 + $0x28] sm:$0xff] }
  0xef   : > { %v534_v55 = vadd.f32 %v518_v52, %v457_v44  ;;  %v535_v56 = vadd.f32 %v519_v53, %v458_v49  ;;  %756 = vmatprep.subr.mxu0 %v1343_v26  ;;  %971 = vmatprep.subr.mxu1 %v1343_v26  ;;  %v680_v52 = vld [vmem:[%s1204_s11 + $0x38] sm:$0xff] }
  0xf0   : > { %757 = vmatpush1.xpose.msra.mxu0 %v1345_v54  ;;  %979 = vmatpush1.xpose.msra.mxu1 %v1345_v54 }
  0xf1   : > { %v611_v57 = vadd.f32 %v595_v32, %v534_v55  ;;  %v612_v28 = vadd.f32 %v596_v33, %v535_v56  ;;  %v398_v62 = vpop.permute.xlu1 %397  ;;  %v676_v33 = vld [vmem:[%s1204_s11 + $0x18] sm:$0xff]  ;;  %v726_v55 = vld [vmem:[%s1387_s14 + $0x20] sm:$0xff] }
  0xf2   : > { %v439_v6 = vmul.f32 %v1206_v37, %v398_v62  ;;  %v440_v7 = vmul.f32 %v1208_v38, %v398_v62  ;;  %v693_v37 = vadd.f32 %v1308_v45, %v1310_v46 }
  0xf3   : > { %vm628_vm13 = vcmp.ge.f32.partialorder %v612_v28, 0.0  ;;  %v644_v63 = vmul.f32 0.2, %v612_v28  ;;  %vm627_vm14 = vcmp.ge.f32.partialorder %v611_v57, 0.0  ;;  %v643_v0 = vmul.f32 0.2, %v611_v57 }
  0xf4   : > { %v455_v36 = vadd.f32 %v439_v6, %v378_v11  ;;  %v456_v1 = vadd.f32 %v440_v7, %v379_v12  ;;  %v728_v12 = vld [vmem:[%s1387_s14 + $0x30] sm:$0xff] }
  0xf5   : > { %v660_v4 = vsel %vm628_vm13, %v612_v28, %v644_v63  ;;  %v659_v5 = vsel %vm627_vm14, %v611_v57, %v643_v0  ;;  %v723_v0 = vld [vmem:[%s1387_s14 + $0x8] sm:$0xff] }
  0xf6   : > { %v475_v8 = vpop.permute.xlu1 %474  ;;  %758 = vmatprep.subr.mxu0 %v660_v4  ;;  %972 = vmatprep.subr.mxu1 %v660_v4  ;;  %v684_v10 = vadd.f32 %v660_v4, %v659_v5 }
  0xf7   : > { %759 = vmatpush1.xpose.msra.mxu0 %v659_v5  ;;  %980 = vmatpush1.xpose.msra.mxu1 %v659_v5  ;;  %v516_v13 = vmul.f32 %v1234_v42, %v475_v8  ;;  %v517_v35 = vmul.f32 %v1236_v43, %v475_v8  ;;  %v699_v42 = vadd.f32 %v1276_v50, %v1278_v51 }
  0xf8   : > { %685 = vadd.xlane.f32.xlu1 %v684_v10  ;;  %v724_v10 = vld [vmem:[%s1387_s14 + $0x10] sm:$0xff] }
  0xf9   : > { %v532_v38 = vadd.f32 %v516_v13, %v455_v36  ;;  %v533_v17 = vadd.f32 %v517_v35, %v456_v1 }
  0xfb   : > { %v552_v16 = vpop.permute.xlu1 %551 }
  0xfc   : > { %v593_v18 = vmul.f32 %v1240_v47, %v552_v16  ;;  %v594_v19 = vmul.f32 %v1242_v48, %v552_v16  ;;  %694 = vadd.xlane.f32.xlu1 %v693_v37  ;;  %v687_v47 = vadd.f32 %v1343_v26, %v1345_v54  ;;  %v690_v48 = vadd.f32 %v1319_v60, %v1321_v61  ;;  %v725_v16 = vld [vmem:[%s1387_s14 + $0x18] sm:$0xff] }
  0xfe   : > { %v609_v20 = vadd.f32 %v593_v18, %v532_v38  ;;  %v610_v9 = vadd.f32 %v594_v19, %v533_v17  ;;  %v729_v17 = vld [vmem:[%s1387_s14 + $0x38] sm:$0xff] }
 0x100   : > { %700 = vadd.xlane.f32.xlu1 %v699_v42  ;;  %vm626_vm15 = vcmp.ge.f32.partialorder %v610_v9, 0.0  ;;  %v642_v43 = vmul.f32 0.2, %v610_v9  ;;  %vm625_vm1 = vcmp.ge.f32.partialorder %v609_v20, 0.0  ;;  %v641_v21 = vmul.f32 0.2, %v609_v20 }
 0x102   : > { %v658_v22 = vsel %vm626_vm15, %v610_v9, %v642_v43  ;;  %v657_v45 = vsel %vm625_vm1, %v609_v20, %v641_v21 }
 0x103   : > { %760 = vmatprep.subr.mxu0 %v658_v22  ;;  %973 = vmatprep.subr.mxu1 %v658_v22  ;;  %v681_v23 = vadd.f32 %v658_v22, %v657_v45 }
 0x104   : > { %794 = vmatprep.mubr.f32.mxu0 %v658_v22  ;;  %761 = vmatpush1.xpose.msra.mxu0 %v657_v45 }
 0x105   : > { %981 = vmatpush1.xpose.msra.mxu1 %v657_v45  ;;  %682 = vadd.xlane.f32.xlu0 %v681_v23 }
 0x107   : > { %795 = vmatmul.mubr.f32.vlgmr.msra.gmra.mxu0 %v657_v45 }
 0x108   : > { %815 = vmatmul.mubr.f32.vlgmr.msra.gmra.mxu1 %v1310_v46  ;;  %799 = vmatprep.mubr.f32.mxu0 %v660_v4  ;;  %v696_v46 = vadd.f32 %v1284_v58, %v1286_v59 }
 0x109   : > { %819 = vmatprep.mubr.f32.mxu1 %v1284_v58  ;;  %688 = vadd.xlane.f32.xlu0 %v687_v47 }
 0x10b   : > { %800 = vmatmul.mubr.f32.gmra.mxu0 %v659_v5 }
 0x10c   : > { %820 = vmatmul.mubr.f32.gmra.mxu1 %v1286_v59  ;;  %804 = vmatprep.mubr.f32.mxu0 %v1343_v26 }
 0x10d   : > { %824 = vmatprep.mubr.f32.mxu1 %v1276_v50  ;;  %691 = vadd.xlane.f32.xlu0 %v690_v48 }
 0x10f   : > { %805 = vmatmul.mubr.f32.gmra.mxu0 %v1345_v54  ;;  %v722_v54 = vld [vmem:[%s1387_s14] sm:$0xff] }
 0x110   : > { %825 = vmatmul.mubr.f32.gmra.mxu1 %v1278_v51  ;;  %809 = vmatprep.mubr.f32.mxu0 %v1319_v60  ;;  %v677_v51 = vld [vmem:[%s1204_s11 + $0x20] sm:$0xff]  ;;  %v679_v60 = vld [vmem:[%s1204_s11 + $0x30] sm:$0xff] }
 0x111   : > { %829 = vmatprep.mubr.f32.mxu1 %v1256_v14  ;;  %697 = vadd.xlane.f32.xlu0 %v696_v46  ;;  %v674_v14 = vld [vmem:[%s1204_s11 + $0x8] sm:$0xff] }
 0x113   : > { %810 = vmatmul.mubr.f32.gmra.mxu0 %v1321_v61 }
 0x114   : > { %830 = vmatmul.mubr.f32.gmra.mxu1 %v1258_v15 }
 0x115   : > { %703 = vadd.xlane.f32.xlu0 %v702_v24 }
 0x181   : > { %v686_v15 = vpop.xlane.xlu1 %685 }
 0x182   : > { %v706_v50 = vadd.f32 %v686_v15, %v674_v14 }
 0x184   : > { %715 = vst.msk [vmem:[%s1204_s11 + $0x8] sm:$0xff] %vm236_vm0, %v706_v50 }
 0x185   : > { %v695_v58 = vpop.xlane.xlu1 %694 }
 0x186   : > { %v709_v59 = vadd.f32 %v695_v58, %v677_v51 }
 0x188   : > { %718 = vst.msk [vmem:[%s1204_s11 + $0x20] sm:$0xff] %vm236_vm0, %v709_v59 }
 0x189   : > { %v701_v61 = vpop.xlane.xlu1 %700 }
 0x18a   : > { %v711_v25 = vadd.f32 %v701_v61, %v679_v60 }
 0x18c   : > { %720 = vst.msk [vmem:[%s1204_s11 + $0x30] sm:$0xff] %vm236_vm0, %v711_v25 }
 0x18e   : > { %v683_v27 = vpop.xlane.xlu0 %682 }
 0x18f   : > { %v705_v29 = vadd.f32 %v683_v27, %v673_v41 }
 0x191   : > { %714 = vst.msk [vmem:[%s1204_s11] sm:$0xff] %vm236_vm0, %v705_v29 }
 0x192   : > { %v689_v31 = vpop.xlane.xlu0 %688 }
 0x193   : > { %v707_v32 = vadd.f32 %v689_v31, %v675_v30 }
 0x195   : > { %716 = vst.msk [vmem:[%s1204_s11 + $0x10] sm:$0xff] %vm236_vm0, %v707_v32 }
 0x196   : > { %v692_v34 = vpop.xlane.xlu0 %691 }
 0x197   : > { %v708_v39 = vadd.f32 %v692_v34, %v676_v33 }
 0x199   : > { %717 = vst.msk [vmem:[%s1204_s11 + $0x18] sm:$0xff] %vm236_vm0, %v708_v39 }
 0x19a   : > { %v698_v44 = vpop.xlane.xlu0 %697 }
 0x19b   : > { %v710_v49 = vadd.f32 %v698_v44, %v678_v40 }
 0x19d   : > { %719 = vst.msk [vmem:[%s1204_s11 + $0x28] sm:$0xff] %vm236_vm0, %v710_v49 }
 0x19e   : > { %v704_v53 = vpop.xlane.xlu0 %703 }
 0x19f   : > { %v712_v26 = vadd.f32 %v704_v53, %v680_v52 }
 0x1a1   : > { %721 = vst.msk [vmem:[%s1204_s11 + $0x38] sm:$0xff] %vm236_vm0, %v712_v26 }
 0x1c7   : > { %v796_v56 = vpop.f32.mrf.mxu0 }
 0x1c8   : > { %v835_v57 = vadd.f32 %v796_v56, %v722_v54  ;;  %v816_v28 = vpop.f32.mrf.mxu1 }
 0x1c9   : > { %v839_v62 = vadd.f32 %v816_v28, %v726_v55  ;;  %v798_v63 = vpop.f32.mrf.mxu0 }
 0x1ca   : > { %844 = vst.msk [vmem:[%s1387_s14] sm:$0xff] %vm245_vm2, %v835_v57  ;;  %v818_v2 = vpop.f32.mrf.mxu1 }
 0x1cb   : > { %848 = vst.msk [vmem:[%s1387_s14 + $0x20] sm:$0xff] %vm245_vm2, %v839_v62  ;;  %v801_v4 = vpop.f32.mrf.mxu0 }
 0x1cc   : > { %v836_v5 = vadd.f32 %v801_v4, %v723_v0  ;;  %v821_v6 = vpop.f32.mrf.mxu1 }
 0x1cd   : > { %v840_v7 = vadd.f32 %v821_v6, %v727_v3  ;;  %v803_v8 = vpop.f32.mrf.mxu0 }
 0x1ce   : > { %845 = vst.msk [vmem:[%s1387_s14 + $0x8] sm:$0xff] %vm245_vm2, %v836_v5  ;;  %v823_v11 = vpop.f32.mrf.mxu1 }
 0x1cf   : > { %849 = vst.msk [vmem:[%s1387_s14 + $0x28] sm:$0xff] %vm245_vm2, %v840_v7  ;;  %v806_v13 = vpop.f32.mrf.mxu0 }
 0x1d0   : > { %v837_v35 = vadd.f32 %v806_v13, %v724_v10  ;;  %v826_v36 = vpop.f32.mrf.mxu1 }
 0x1d1   : > { %v841_v1 = vadd.f32 %v826_v36, %v728_v12  ;;  %v808_v37 = vpop.f32.mrf.mxu0 }
 0x1d2   : > { %846 = vst.msk [vmem:[%s1387_s14 + $0x10] sm:$0xff] %vm245_vm2, %v837_v35  ;;  %v828_v38 = vpop.f32.mrf.mxu1 }
 0x1d3   : > { %850 = vst.msk [vmem:[%s1387_s14 + $0x30] sm:$0xff] %vm245_vm2, %v841_v1  ;;  %v811_v18 = vpop.f32.mrf.mxu0 }
 0x1d4   : > { %v838_v19 = vadd.f32 %v811_v18, %v725_v16  ;;  %v831_v20 = vpop.f32.mrf.mxu1 }
 0x1d5   : > { %v842_v9 = vadd.f32 %v831_v20, %v729_v17  ;;  %v813_v42 = vpop.f32.mrf.mxu0 }
 0x1d6   : > { %847 = vst.msk [vmem:[%s1387_s14 + $0x18] sm:$0xff] %vm245_vm2, %v838_v19  ;;  %v833_v43 = vpop.f32.mrf.mxu1 }
 0x1d7   : > { %851 = vst.msk [vmem:[%s1387_s14 + $0x38] sm:$0xff] %vm245_vm2, %v842_v9 }
 0x1d8 PF: > { %s15_s17 = sadd.s32 1, %s1060_s17   ;;  %s1475_s15 = smov %s1056_s16 }
 0x1d9   : > { %p12_p6 = scmp.ge.s32.totalorder %s15_s17, 4   ;;  %s1476_s16 = smov %s1478_s18 }
 0x1db   :  { %14 = sbr.rel (!%p12_p6) target bundleno = 2 (0x2), region = 81 }

// kernel: pixel_discriminator.3
= control target key start
LH: loop header
LB: loop body
LE: loop exit
PB: predicated region body
PF: predicated region fallthrough
CT: control target
= control target key end

     0   :  { %s1321_s21 = smov 0   ;;  %s1797_s0 = inlined_call_operand.vmem [shape: f32[4,512], index: 0, kind: input, shape index: {}]   ;;  %s1798_s1 = inlined_call_operand.vmem [shape: f32[64,4], index: 1, kind: input, shape index: {}]   ;;  %s1799_s2 = inlined_call_operand.vmem [shape: f32[64,1], index: 2, kind: input, shape index: {}]   ;;  %s1800_s3 = inlined_call_operand.vmem [shape: bf16[128,64], index: 3, kind: input, shape index: {}]   ;;  %s1801_s4 = inlined_call_operand.vmem [shape: f32[128,1], index: 4, kind: input, shape index: {}]   ;;  %s1802_s5 = inlined_call_operand.vmem [shape: bf16[1,128], index: 5, kind: input, shape index: {}]   ;;  %s1803_s6 = inlined_call_operand.vmem [shape: f32[1,512], index: 6, kind: output, shape index: {}]  }
   0x1 LB: > { %s1198_s22 = sadd.s32 4294967295, %s1279_s21   ;;  %p1202_p0 = scmp.ge.s32.totalorder %s1279_s21, 1  ;;  %s1279_s21 = sphi %s1321_s21, %s16_s21  }
   0x2   : > { %p213_p1 = scmp.lt.s32.totalorder %s1279_s21, 3 }
   0x4   : > { %p214_p2 = pnand %p1202_p0, %p213_p1 }
   0x5   : > { %s1203_s9 = sshll.u32 (!%p214_p2), %s1198_s22, 1 }
   0x6   : > { %217 = sbr.rel (%p214_p2) target bundleno = 760 (0x2f8), region = 44  ;;  %p243_p3 = scmp.lt.s32.totalorder (!%p214_p2), %s1203_s9, 3 }
   0xb   : > { %v266_v0 = vld [vmem:[%s1798_s1 + $0x20] sm:$0xff]  ;;  %v260_v1 = vld [vmem:[%s1799_s2 + $0x30] sm:$0xff]  ;;  %v1281_v2 = vmov 2   ;;  %v1282_v3 = vmov 0   ;;  %v261_v4 = vld [vmem:[%s1799_s2 + $0x38] sm:$0xff]  ;;  %v1283_v7 = vmov 1   ;;  %v312_v28 = vlaneseq }
   0xc   : > { %1248 = vset.pattern.permute.xlu0 %v1281_v2  ;;  %1240 = vset.pattern.permute.xlu1 %v1282_v3  ;;  %v268_v5 = vld [vmem:[%s1798_s1 + $0x30] sm:$0xff]  ;;  %v269_v6 = vld [vmem:[%s1798_s1 + $0x38] sm:$0xff]  ;;  %v267_v8 = vld [vmem:[%s1798_s1 + $0x28] sm:$0xff]  ;;  %v1284_v14 = vmov 3   ;;  %s1805_s9 = smov (!%p243_p3, %s1203_s9), 3 }
   0xd   : > { %490 = vperm.xlu0 %1248, %v266_v0   ;;  %370 = vperm.xlu1 %1240, %v260_v1   ;;  %v258_v9 = vld [vmem:[%s1799_s2 + $0x20] sm:$0xff]  ;;  %v257_v10 = vld [vmem:[%s1799_s2 + $0x18] sm:$0xff]  ;;  %v263_v11 = vld [vmem:[%s1798_s1 + $0x8] sm:$0xff]  ;;  %s1204_s10 = sshll.u32 %s1805_s9, 2  ;;  %v1408_v31 = vshrl.u32 %v312_v28, 7  ;;  %s251_s23 = scalar_lea.vmem %s1803_s6, %s1805_s9 }
   0xe   : > { %890 = vmatprep.mubr.bf16.mxu0 %v1282_v3  ;;  %1116 = vmatprep.mubr.bf16.mxu1 %v1282_v3  ;;  %v259_v12 = vld [vmem:[%s1799_s2 + $0x28] sm:$0xff]  ;;  %v254_v13 = vld [vmem:[%s1799_s2] sm:$0xff]  ;;  %v264_v16 = vld [vmem:[%s1798_s1 + $0x10] sm:$0xff]  ;;  %s246_s12 = scalar_lea.vmem %s1797_s0, %s1204_s10 }
   0xf   : > { %v262_v15 = vld [vmem:[%s1798_s1] sm:$0xff]  ;;  %v265_v17 = vld [vmem:[%s1798_s1 + $0x18] sm:$0xff]  ;;  %v256_v18 = vld [vmem:[%s1799_s2 + $0x10] sm:$0xff]  ;;  %v318_v34 = vsub.s32 1, %v1408_v31  ;;  %v314_v35 = vsub.s32 0, %v1408_v31 }
  0x10   : > { %v255_v19 = vld [vmem:[%s1799_s2 + $0x8] sm:$0xff]  ;;  %v270_v36 = vld [vmem:[%s246_s12] ss:$4 sm:$0x3] }
  0x11   : > { %1249 = vset.pattern.permute.xlu0 %v1282_v3  ;;  %375 = vperm.xlu1 %1240, %v261_v4   ;;  %v1419_v38 = vrot.slane %v270_v36, %v318_v34  ;;  %v1423_v40 = vrot.slane %v270_v36, %v314_v35  ;;  %v1206_v42 = vld [vmem:[%s246_s12 + $0x1] ss:$4 sm:$0x3]  ;;  %v1207_v44 = vld [vmem:[%s246_s12 + $0x2] ss:$4 sm:$0x3] }
  0x12   : > { %303 = vperm.xlu0 %1249, %v268_v5   ;;  %v1429_v46 = vrot.slane %v1206_v42, %v314_v35  ;;  %v1431_v47 = vrot.slane %v1206_v42, %v318_v34  ;;  %v1208_v52 = vld [vmem:[%s246_s12 + $0x3] ss:$4 sm:$0x3]  ;;  %v1437_v53 = vrot.slane %v1207_v44, %v318_v34  ;;  %v1439_v55 = vrot.slane %v1207_v44, %v314_v35  ;;  %v711_v4 = vld [vmem:[%s1801_s4 + $0x70] sm:$0xff] }
  0x13   : > { %v1443_v61 = vrot.slane %v1208_v52, %v318_v34 }
  0x15   : > { %1241 = vset.pattern.permute.xlu1 %v1283_v7 }
  0x16   : > { %308 = vperm.xlu0 %1249, %v269_v6   ;;  %425 = vperm.xlu1 %1241, %v269_v6  }
  0x1a   : > { %298 = vperm.xlu0 %1249, %v267_v8   ;;  %1242 = vset.pattern.permute.xlu1 %v1282_v3 }
  0x1b   : > { %293 = vperm.xlu1 %1242, %v266_v0  }
  0x1e   : > { %360 = vperm.xlu0 %1249, %v258_v9  }
  0x1f   : > { %1243 = vset.pattern.permute.xlu1 %v1281_v2 }
  0x20   : > { %498 = vperm.xlu1 %1243, %v268_v5  }
  0x22   : > { %355 = vperm.xlu0 %1249, %v257_v10  }
  0x24   : > { %502 = vperm.xlu1 %1243, %v269_v6  }
  0x26   : > { %278 = vperm.xlu0 %1249, %v263_v11  }
  0x28   : > { %1244 = vset.pattern.permute.xlu1 %v1282_v3 }
  0x29   : > { %365 = vperm.xlu1 %1244, %v259_v12  }
  0x2a   : > { %340 = vperm.xlu0 %1249, %v254_v13  }
  0x2d   : > { %1245 = vset.pattern.permute.xlu1 %v1283_v7 }
  0x2e   : > { %417 = vperm.xlu1 %1245, %v267_v8   ;;  %1256 = vset.pattern.permute.xlu0 %v1283_v7 }
  0x2f   : > { %421 = vperm.xlu0 %1256, %v268_v5  }
  0x32   : > { %1246 = vset.pattern.permute.xlu1 %v1284_v14 }
  0x33   : > { %575 = vperm.xlu1 %1246, %v268_v5   ;;  %413 = vperm.xlu0 %1256, %v266_v0  }
  0x37   : > { %1247 = vset.pattern.permute.xlu1 %v1282_v3  ;;  %397 = vperm.xlu0 %1256, %v262_v15  }
  0x38   : > { %283 = vperm.xlu1 %1247, %v264_v16  }
  0x3b   : > { %1258 = vset.pattern.permute.xlu0 %v1284_v14 }
  0x3c   : > { %288 = vperm.xlu1 %1247, %v265_v17   ;;  %579 = vperm.xlu0 %1258, %v269_v6  }
  0x40   : > { %1250 = vset.pattern.permute.xlu1 %v1281_v2  ;;  %567 = vperm.xlu0 %1258, %v266_v0   ;;  %v1447_v0 = vrot.slane %v1208_v52, %v314_v35 }
  0x41   : > { %494 = vperm.xlu1 %1250, %v267_v8  }
  0x44   : > { %563 = vperm.xlu0 %1258, %v265_v17  }
  0x45   : > { %1251 = vset.pattern.permute.xlu1 %v1282_v3 }
  0x46   : > { %350 = vperm.xlu1 %1251, %v256_v18  }
  0x48   : > { %551 = vperm.xlu0 %1258, %v262_v15  }
  0x4a   : > { %1252 = vset.pattern.permute.xlu1 %v1283_v7 }
  0x4b   : > { %405 = vperm.xlu1 %1252, %v264_v16  }
  0x4c   : > { %1263 = vset.pattern.permute.xlu0 %v1282_v3 }
  0x4d   : > { %785 = vperm.xlu0 %1263, %v711_v4  }
  0x4f   : > { %409 = vperm.xlu1 %1252, %v265_v17  }
  0x53   : > { %1253 = vset.pattern.permute.xlu1 %v1284_v14 }
  0x54   : > { %571 = vperm.xlu1 %1253, %v267_v8  }
  0x58   : > { %1254 = vset.pattern.permute.xlu1 %v1282_v3 }
  0x59   : > { %273 = vperm.xlu1 %1254, %v262_v15  }
  0x5d   : > { %1255 = vset.pattern.permute.xlu1 %v1281_v2 }
  0x5e   : > { %482 = vperm.xlu1 %1255, %v264_v16  }
  0x62   : > { %486 = vperm.xlu1 %1255, %v265_v17  }
  0x66   : > { %1257 = vset.pattern.permute.xlu1 %v1282_v3 }
  0x67   : > { %345 = vperm.xlu1 %1257, %v255_v19  }
  0x6b   : > { %1259 = vset.pattern.permute.xlu1 %v1283_v7 }
  0x6c   : > { %401 = vperm.xlu1 %1259, %v263_v11  }
  0x70   : > { %1260 = vset.pattern.permute.xlu1 %v1284_v14 }
  0x71   : > { %559 = vperm.xlu1 %1260, %v264_v16  }
  0x75   : > { %1261 = vset.pattern.permute.xlu1 %v1281_v2  ;;  %v712_v2 = vld [vmem:[%s1801_s4 + $0x78] sm:$0xff] }
  0x76   : > { %474 = vperm.xlu1 %1261, %v262_v15  }
  0x7a   : > { %478 = vperm.xlu1 %1261, %v263_v11  }
  0x7e   : > { %1262 = vset.pattern.permute.xlu1 %v1284_v14 }
  0x7f   : > { %555 = vperm.xlu1 %1262, %v263_v11   ;;  %v709_v11 = vld [vmem:[%s1801_s4 + $0x60] sm:$0xff] }
  0x83   : > { %1264 = vset.pattern.permute.xlu1 %v1282_v3 }
  0x84   : > { %790 = vperm.xlu1 %1264, %v712_v2   ;;  %v703_v2 = vld [vmem:[%s1801_s4 + $0x30] sm:$0xff] }
  0x88   : > { %v371_v20 = vpop.permute.xlu1 %370  ;;  %v1394_v21 = vpop.permute.xlu0 %490  ;;  %775 = vperm.xlu1 %1264, %v709_v11  }
  0x8c   : > { %v376_v22 = vpop.permute.xlu1 %375 }
  0x8d   : > { %v304_v23 = vpop.permute.xlu0 %303 }
  0x8e   : > { %v335_v43 = vmul.f32 %v1419_v38, %v304_v23  ;;  %v334_v45 = vmul.f32 %v1423_v40, %v304_v23 }
  0x90   : > { %v391_v54 = vadd.f32 %v371_v20, %v335_v43  ;;  %v390_v56 = vadd.f32 %v371_v20, %v334_v45 }
  0x91   : > { %v309_v24 = vpop.permute.xlu0 %308  ;;  %v426_v25 = vpop.permute.xlu1 %425 }
  0x92   : > { %v336_v57 = vmul.f32 %v1423_v40, %v309_v24  ;;  %v337_v58 = vmul.f32 %v1419_v38, %v309_v24  ;;  %v453_v15 = vmul.f32 %v1429_v46, %v426_v25  ;;  %v454_v16 = vmul.f32 %v1431_v47, %v426_v25  ;;  %v707_v25 = vld [vmem:[%s1801_s4 + $0x50] sm:$0xff] }
  0x93   : > { %765 = vperm.xlu1 %1264, %v707_v25  }
  0x94   : > { %v392_v6 = vadd.f32 %v376_v22, %v336_v57  ;;  %v393_v7 = vadd.f32 %v376_v22, %v337_v58 }
  0x95   : > { %v1398_v26 = vpop.permute.xlu0 %298 }
  0x96   : > { %v1400_v27 = vpop.permute.xlu1 %293  ;;  %v469_v19 = vadd.f32 %v453_v15, %v392_v6  ;;  %v470_v20 = vadd.f32 %v454_v16, %v393_v7  ;;  %v699_v16 = vld [vmem:[%s1801_s4 + $0x10] sm:$0xff] }
  0x97   : > { %v330_v6 = vmul.f32 %v1423_v40, %v1400_v27  ;;  %v331_v7 = vmul.f32 %v1419_v38, %v1400_v27 }
  0x99   : > { %v1404_v29 = vpop.permute.xlu0 %360 }
  0x9a   : > { %v387_v27 = vadd.f32 %v1404_v29, %v331_v7 }
  0x9b   : > { %v499_v30 = vpop.permute.xlu1 %498 }
  0x9c   : > { %v529_v1 = vmul.f32 %v1437_v53, %v499_v30  ;;  %v528_v5 = vmul.f32 %v1439_v55, %v499_v30 }
  0x9d   : > { %v1410_v32 = vpop.permute.xlu0 %355 }
  0x9f   : > { %v503_v33 = vpop.permute.xlu1 %502 }
  0xa0   : > { %v530_v17 = vmul.f32 %v1439_v55, %v503_v33  ;;  %v531_v18 = vmul.f32 %v1437_v53, %v503_v33  ;;  %v710_v33 = vld [vmem:[%s1801_s4 + $0x68] sm:$0xff] }
  0xa1   : > { %v1417_v37 = vpop.permute.xlu0 %278  ;;  %780 = vperm.xlu0 %1263, %v710_v33  }
  0xa2   : > { %v546_v34 = vadd.f32 %v530_v17, %v469_v19  ;;  %v547_v35 = vadd.f32 %v531_v18, %v470_v20  ;;  %v332_v17 = vmul.f32 %v1423_v40, %v1398_v26  ;;  %v524_v19 = vmul.f32 %v1439_v55, %v1394_v21 }
  0xa4   : > { %v1421_v39 = vpop.permute.xlu1 %365 }
  0xa5   : > { %v1425_v41 = vpop.permute.xlu0 %340 }
  0xa9   : > { %v1433_v48 = vpop.permute.xlu1 %417 }
  0xaa   : > { %v422_v49 = vpop.permute.xlu0 %421 }
  0xab   : > { %v451_v50 = vmul.f32 %v1429_v46, %v422_v49  ;;  %v452_v51 = vmul.f32 %v1431_v47, %v422_v49  ;;  %v705_v49 = vld [vmem:[%s1801_s4 + $0x40] sm:$0xff] }
  0xac   : > { %755 = vperm.xlu1 %1264, %v705_v49  }
  0xad   : > { %v468_v59 = vadd.f32 %v452_v51, %v391_v54  ;;  %v467_v63 = vadd.f32 %v451_v50, %v390_v56  ;;  %v708_v50 = vld [vmem:[%s1801_s4 + $0x58] sm:$0xff] }
  0xae   : > { %v576_v60 = vpop.permute.xlu1 %575  ;;  %v1445_v62 = vpop.permute.xlu0 %413  ;;  %770 = vperm.xlu0 %1263, %v708_v50  }
  0xaf   : > { %v545_v8 = vadd.f32 %v529_v1, %v468_v59  ;;  %v606_v9 = vmul.f32 %v1443_v61, %v576_v60  ;;  %v544_v12 = vadd.f32 %v528_v5, %v467_v63  ;;  %v605_v13 = vmul.f32 %v1447_v0, %v576_v60  ;;  %v706_v5 = vld [vmem:[%s1801_s4 + $0x48] sm:$0xff] }
  0xb0   : > { %745 = vperm.xlu1 %1264, %v703_v2   ;;  %v448_v11 = vmul.f32 %v1431_v47, %v1445_v62 }
  0xb1   : > { %v622_v22 = vadd.f32 %v606_v9, %v545_v8  ;;  %v621_v23 = vadd.f32 %v605_v13, %v544_v12  ;;  %v701_v8 = vld [vmem:[%s1801_s4 + $0x20] sm:$0xff]  ;;  %v447_v9 = vmul.f32 %v1429_v46, %v1445_v62  ;;  %v704_v12 = vld [vmem:[%s1801_s4 + $0x38] sm:$0xff]  ;;  %v386_v13 = vadd.f32 %v1404_v29, %v330_v6 }
  0xb2   : > { %v1458_v10 = vpop.permute.xlu0 %397  ;;  %760 = vperm.xlu0 %1263, %v706_v5   ;;  %v333_v62 = vmul.f32 %v1419_v38, %v1398_v26  ;;  %v525_v29 = vmul.f32 %v1437_v53, %v1394_v21  ;;  %v450_v26 = vmul.f32 %v1431_v47, %v1433_v48  ;;  %v697_v21 = vld [vmem:[%s1801_s4] sm:$0xff] }
  0xb3   : > { %v1464_v14 = vpop.permute.xlu1 %283  ;;  %v654_v45 = vmul.f32 0.2, %v622_v22  ;;  %vm638_vm0 = vcmp.ge.f32.partialorder %v622_v22, 0.0  ;;  %v653_v51 = vmul.f32 0.2, %v621_v23  ;;  %vm637_vm2 = vcmp.ge.f32.partialorder %v621_v23, 0.0 }
  0xb4   : > { %735 = vperm.xlu1 %1264, %v701_v8   ;;  %v463_v20 = vadd.f32 %v447_v9, %v386_v13  ;;  %v389_v25 = vadd.f32 %v1421_v39, %v333_v62  ;;  %v439_v8 = vmul.f32 %v1429_v46, %v1458_v10  ;;  %v440_v9 = vmul.f32 %v1431_v47, %v1458_v10 }
  0xb5   : > { %v670_v57 = vsel %vm638_vm0, %v622_v22, %v654_v45  ;;  %v669_v60 = vsel %vm637_vm2, %v621_v23, %v653_v51  ;;  %v464_v22 = vadd.f32 %v448_v11, %v387_v27  ;;  %v702_v23 = vld [vmem:[%s1801_s4 + $0x28] sm:$0xff]  ;;  %v700_v45 = vld [vmem:[%s1801_s4 + $0x18] sm:$0xff]  ;;  %vm833_vm0 = vcmask 523264  }
  0xb6   : > { %750 = vperm.xlu0 %1263, %v704_v12   ;;  %v540_v33 = vadd.f32 %v524_v19, %v463_v20  ;;  %v466_v50 = vadd.f32 %v450_v26, %v389_v25 }
  0xb7   : > { %v1470_v24 = vpop.permute.xlu1 %288  ;;  %v580_v30 = vpop.permute.xlu0 %579 }
  0xb8   : > { %v607_v36 = vmul.f32 %v1447_v0, %v580_v30  ;;  %v608_v42 = vmul.f32 %v1443_v61, %v580_v30  ;;  %725 = vperm.xlu1 %1264, %v699_v16   ;;  %v449_v30 = vmul.f32 %v1429_v46, %v1433_v48  ;;  %v329_v26 = vmul.f32 %v1419_v38, %v1470_v24 }
  0xba   : > { %v623_v43 = vadd.f32 %v607_v36, %v546_v34  ;;  %v624_v44 = vadd.f32 %v608_v42, %v547_v35  ;;  %v388_v42 = vadd.f32 %v1421_v39, %v332_v17  ;;  %740 = vperm.xlu0 %1263, %v702_v23  }
  0xbb   : > { %v568_v18 = vpop.permute.xlu0 %567 }
  0xbc   : > { %v495_v52 = vpop.permute.xlu1 %494  ;;  %vm640_vm1 = vcmp.ge.f32.partialorder %v624_v44, 0.0  ;;  %v656_v54 = vmul.f32 0.2, %v624_v44  ;;  %vm639_vm3 = vcmp.ge.f32.partialorder %v623_v43, 0.0  ;;  %v655_v56 = vmul.f32 0.2, %v623_v43  ;;  %715 = vperm.xlu1 %1264, %v697_v21  }
  0xbd   : > { %v601_v34 = vmul.f32 %v1447_v0, %v568_v18  ;;  %v602_v35 = vmul.f32 %v1443_v61, %v568_v18  ;;  %v527_v48 = vmul.f32 %v1437_v53, %v495_v52  ;;  %v465_v49 = vadd.f32 %v449_v30, %v388_v42 }
  0xbe   : > { %v672_v58 = vsel %vm640_vm1, %v624_v44, %v656_v54  ;;  %v671_v63 = vsel %vm639_vm3, %v623_v43, %v655_v56  ;;  %v541_v43 = vadd.f32 %v525_v29, %v464_v22  ;;  %v526_v44 = vmul.f32 %v1439_v55, %v495_v52  ;;  %730 = vperm.xlu0 %1263, %v700_v45   ;;  %v698_v52 = vld [vmem:[%s1801_s4 + $0x8] sm:$0xff] }
  0xbf   : > { %v696_v59 = vpack.c.bf16 %v672_v58, %v670_v57  ;;  %v695_v1 = vpack.c.bf16 %v671_v63, %v669_v60  ;;  %v617_v51 = vadd.f32 %v601_v34, %v540_v33  ;;  %v543_v39 = vadd.f32 %v527_v48, %v466_v50 }
  0xc0   : > { %v618_v54 = vadd.f32 %v602_v35, %v541_v43  ;;  %v542_v57 = vadd.f32 %v526_v44, %v465_v49  ;;  %v328_v30 = vmul.f32 %v1423_v40, %v1470_v24  ;;  %v385_v42 = vadd.f32 %v1410_v32, %v329_v26  ;;  %v564_v43 = vpop.permute.xlu0 %563 }
  0xc1   : > { %v1489_v4 = vpop.permute.xlu1 %350  ;;  %866 = vmatprep.subr.bf16.mxu0 %v696_v59  ;;  %v649_v60 = vmul.f32 0.2, %v617_v51  ;;  %vm633_vm5 = vcmp.ge.f32.partialorder %v617_v51, 0.0  ;;  %v326_v45 = vmul.f32 %v1423_v40, %v1464_v14  ;;  %v327_v24 = vmul.f32 %v1419_v38, %v1464_v14 }
  0xc2   : > { %867 = vmatpush1.bf16.msra.mxu0 %v695_v1  ;;  %v650_v63 = vmul.f32 0.2, %v618_v54  ;;  %vm634_vm4 = vcmp.ge.f32.partialorder %v618_v54, 0.0  ;;  %720 = vperm.xlu0 %1263, %v698_v52   ;;  %v600_v49 = vmul.f32 %v1443_v61, %v564_v43 }
  0xc3   : > { %v665_v16 = vsel %vm633_vm5, %v617_v51, %v649_v60 }
  0xc4   : > { %v666_v13 = vsel %vm634_vm4, %v618_v54, %v650_v63 }
  0xc6   : > { %v1510_v15 = vpop.permute.xlu1 %405 }
  0xc7   : > { %v444_v50 = vmul.f32 %v1431_v47, %v1510_v15 }
  0xca   : > { %v410_v36 = vpop.permute.xlu1 %409 }
  0xcb   : > { %v445_v34 = vmul.f32 %v1429_v46, %v410_v36  ;;  %v446_v35 = vmul.f32 %v1431_v47, %v410_v36  ;;  %v599_v36 = vmul.f32 %v1447_v0, %v564_v43 }
  0xcd   : > { %v462_v48 = vadd.f32 %v446_v35, %v385_v42 }
  0xcf   : > { %v572_v56 = vpop.permute.xlu1 %571 }
  0xd0   : > { %v603_v58 = vmul.f32 %v1447_v0, %v572_v56  ;;  %v604_v59 = vmul.f32 %v1443_v61, %v572_v56 }
  0xd2   : > { %v619_v1 = vadd.f32 %v603_v58, %v542_v57  ;;  %v620_v2 = vadd.f32 %v604_v59, %v543_v39  ;;  %v382_v57 = vadd.f32 %v1489_v4, %v326_v45  ;;  %v383_v39 = vadd.f32 %v1489_v4, %v327_v24 }
  0xd4   : > { %v651_v5 = vmul.f32 0.2, %v619_v1  ;;  %v652_v6 = vmul.f32 0.2, %v620_v2  ;;  %v274_v7 = vpop.permute.xlu1 %273  ;;  %vm636_vm6 = vcmp.ge.f32.partialorder %v620_v2, 0.0  ;;  %vm635_vm7 = vcmp.ge.f32.partialorder %v619_v1, 0.0 }
  0xd5   : > { %v322_v11 = vmul.f32 %v1423_v40, %v274_v7  ;;  %v323_v12 = vmul.f32 %v1419_v38, %v274_v7  ;;  %v460_v52 = vadd.f32 %v444_v50, %v383_v39 }
  0xd6   : > { %v668_v27 = vsel %vm636_vm6, %v620_v2, %v652_v6  ;;  %v667_v17 = vsel %vm635_vm7, %v619_v1, %v651_v5 }
  0xd7   : > { %v378_v62 = vadd.f32 %v1425_v41, %v322_v11  ;;  %v379_v18 = vadd.f32 %v1425_v41, %v323_v12  ;;  %v694_v19 = vpack.c.bf16 %v668_v27, %v666_v13  ;;  %v693_v29 = vpack.c.bf16 %v667_v17, %v665_v16  ;;  %v552_v17 = vpop.permute.xlu0 %551 }
  0xd8   : > { %v384_v41 = vadd.f32 %v1410_v32, %v328_v30  ;;  %v443_v32 = vmul.f32 %v1429_v46, %v1510_v15  ;;  %v594_v43 = vmul.f32 %v1443_v61, %v552_v17 }
  0xd9   : > { %v483_v20 = vpop.permute.xlu1 %482  ;;  %868 = vmatprep.subr.bf16.mxu0 %v694_v19  ;;  %v455_v22 = vadd.f32 %v439_v8, %v378_v62  ;;  %v456_v23 = vadd.f32 %v440_v9, %v379_v18 }
  0xda   : > { %869 = vmatpush1.bf16.msra.mxu0 %v693_v29  ;;  %v461_v44 = vadd.f32 %v445_v34, %v384_v41  ;;  %v520_v58 = vmul.f32 %v1439_v55, %v483_v20  ;;  %v521_v14 = vmul.f32 %v1437_v53, %v483_v20  ;;  %v459_v59 = vadd.f32 %v443_v32, %v382_v57 }
  0xdb   : > { %v324_v20 = vmul.f32 %v1423_v40, %v1417_v37 }
  0xdc   : > { %v536_v2 = vadd.f32 %v520_v58, %v459_v59  ;;  %v537_v5 = vadd.f32 %v521_v14, %v460_v52  ;;  %v1267_v59 = vld [vmem:[%s1800_s3 + $0x10] sm:$0xff]   ;;  %v1268_v52 = vld [vmem:[%s1800_s3 + $0x18] sm:$0xff]  }
  0xdd   : > { %v487_v10 = vpop.permute.xlu1 %486 }
  0xde   : > { %v522_v25 = vmul.f32 %v1439_v55, %v487_v10  ;;  %v523_v33 = vmul.f32 %v1437_v53, %v487_v10  ;;  %v325_v10 = vmul.f32 %v1419_v38, %v1417_v37 }
  0xe0   : > { %v538_v51 = vadd.f32 %v522_v25, %v461_v44  ;;  %v539_v54 = vadd.f32 %v523_v33, %v462_v48  ;;  %v593_v33 = vmul.f32 %v1447_v0, %v552_v17 }
  0xe2   : > { %v346_v21 = vpop.permute.xlu1 %345  ;;  %v615_v60 = vadd.f32 %v599_v36, %v538_v51  ;;  %v616_v63 = vadd.f32 %v600_v49, %v539_v54 }
  0xe3   : > { %v380_v44 = vadd.f32 %v346_v21, %v324_v20  ;;  %v381_v48 = vadd.f32 %v346_v21, %v325_v10 }
  0xe4   : > { %v647_v7 = vmul.f32 0.2, %v615_v60  ;;  %v648_v8 = vmul.f32 0.2, %v616_v63  ;;  %vm632_vm8 = vcmp.ge.f32.partialorder %v616_v63, 0.0  ;;  %vm631_vm9 = vcmp.ge.f32.partialorder %v615_v60, 0.0 }
  0xe6   : > { %v664_v18 = vsel %vm632_vm8, %v616_v63, %v648_v8  ;;  %v663_v29 = vsel %vm631_vm9, %v615_v60, %v647_v7  ;;  %v1269_v60 = vld [vmem:[%s1800_s3 + $0x20] sm:$0xff]   ;;  %v1270_v63 = vld [vmem:[%s1800_s3 + $0x28] sm:$0xff]  }
  0xe7   : > { %v402_v56 = vpop.permute.xlu1 %401 }
  0xe8   : > { %v441_v34 = vmul.f32 %v1429_v46, %v402_v56  ;;  %v442_v35 = vmul.f32 %v1431_v47, %v402_v56 }
  0xea   : > { %v457_v38 = vadd.f32 %v441_v34, %v380_v44  ;;  %v458_v45 = vadd.f32 %v442_v35, %v381_v48 }
  0xec   : > { %v560_v1 = vpop.permute.xlu1 %559 }
  0xed   : > { %v597_v15 = vmul.f32 %v1447_v0, %v560_v1  ;;  %v598_v6 = vmul.f32 %v1443_v61, %v560_v1  ;;  %v1271_v1 = vld [vmem:[%s1800_s3 + $0x30] sm:$0xff]  }
  0xef   : > { %v613_v9 = vadd.f32 %v597_v15, %v536_v2  ;;  %v614_v11 = vadd.f32 %v598_v6, %v537_v5  ;;  %v1272_v2 = vld [vmem:[%s1800_s3 + $0x38] sm:$0xff]   ;;  %v1636_v15 = vpop.permute.xlu0 %785 }
  0xf1   : > { %v645_v4 = vmul.f32 0.2, %v613_v9  ;;  %v646_v12 = vmul.f32 0.2, %v614_v11  ;;  %v475_v13 = vpop.permute.xlu1 %474  ;;  %vm630_vm10 = vcmp.ge.f32.partialorder %v614_v11, 0.0  ;;  %vm629_vm11 = vcmp.ge.f32.partialorder %v613_v9, 0.0 }
  0xf2   : > { %v516_v27 = vmul.f32 %v1439_v55, %v475_v13  ;;  %v517_v16 = vmul.f32 %v1437_v53, %v475_v13 }
  0xf3   : > { %v662_v62 = vsel %vm630_vm10, %v614_v11, %v646_v12  ;;  %v661_v19 = vsel %vm629_vm11, %v613_v9, %v645_v4 }
  0xf4   : > { %v692_v30 = vpack.c.bf16 %v664_v18, %v662_v62  ;;  %v691_v26 = vpack.c.bf16 %v663_v29, %v661_v19  ;;  %v532_v41 = vadd.f32 %v516_v27, %v455_v22  ;;  %v533_v42 = vadd.f32 %v517_v16, %v456_v23 }
  0xf5   : > { %v479_v25 = vpop.permute.xlu1 %478 }
  0xf6   : > { %870 = vmatprep.subr.bf16.mxu0 %v692_v30  ;;  %v518_v40 = vmul.f32 %v1439_v55, %v479_v25  ;;  %v519_v37 = vmul.f32 %v1437_v53, %v479_v25  ;;  %v609_v46 = vadd.f32 %v593_v33, %v532_v41  ;;  %v610_v24 = vadd.f32 %v594_v43, %v533_v42 }
  0xf7   : > { %871 = vmatpush1.bf16.msra.mxu0 %v691_v26 }
  0xf8   : > { %v534_v22 = vadd.f32 %v518_v40, %v457_v38  ;;  %v535_v23 = vadd.f32 %v519_v37, %v458_v45  ;;  %v642_v51 = vmul.f32 0.2, %v610_v24  ;;  %v641_v21 = vmul.f32 0.2, %v609_v46 }
  0xf9   : > { %vm626_vm12 = vcmp.ge.f32.partialorder %v610_v24, 0.0  ;;  %vm625_vm13 = vcmp.ge.f32.partialorder %v609_v46, 0.0 }
  0xfa   : > { %v556_v47 = vpop.permute.xlu1 %555  ;;  %v658_v54 = vsel %vm626_vm12, %v610_v24, %v642_v51  ;;  %v657_v57 = vsel %vm625_vm13, %v609_v46, %v641_v21 }
  0xfb   : > { %v595_v36 = vmul.f32 %v1447_v0, %v556_v47  ;;  %v596_v49 = vmul.f32 %v1443_v61, %v556_v47  ;;  %v1265_v61 = vld [vmem:[%s1800_s3] sm:$0xff]   ;;  %v1266_v0 = vld [vmem:[%s1800_s3 + $0x8] sm:$0xff]  }
  0xfd   : > { %v611_v32 = vadd.f32 %v595_v36, %v534_v22  ;;  %v612_v50 = vadd.f32 %v596_v49, %v535_v23 }
  0xff   : > { %v643_v55 = vmul.f32 0.2, %v611_v32  ;;  %v644_v53 = vmul.f32 0.2, %v612_v50  ;;  %vm628_vm14 = vcmp.ge.f32.partialorder %v612_v50, 0.0  ;;  %vm627_vm15 = vcmp.ge.f32.partialorder %v611_v32, 0.0  ;;  %v1634_v5 = vpop.permute.xlu1 %790 }
 0x101   : > { %v660_v56 = vsel %vm628_vm14, %v612_v50, %v644_v53  ;;  %v659_v39 = vsel %vm627_vm15, %v611_v32, %v643_v55 }
 0x102   : > { %v690_v58 = vpack.c.bf16 %v660_v56, %v658_v54  ;;  %v689_v14 = vpack.c.bf16 %v659_v39, %v657_v57 }
 0x103   : > { %v1638_v6 = vpop.permute.xlu1 %775 }
 0x104   : > { %872 = vmatprep.subr.bf16.mxu0 %v690_v58 }
 0x105   : > { %873 = vmatpush1.bf16.msra.mxu0 %v689_v14 }
 0x108   : > { %1217 = vmatmul.mubr.msk.bf16.vlgmr.msra.gmra.mxu0 %vm833_vm0, %v1265_v61 }
 0x109   : > { %900 = vmatprep.mubr.bf16.mxu0 %v1282_v3 }
 0x10e   : > { %v1642_v8 = vpop.permute.xlu1 %765 }
 0x110   : > { %1218 = vmatmul.mubr.msk.bf16.gmra.mxu0 %vm833_vm0, %v1266_v0 }
 0x111   : > { %910 = vmatprep.mubr.bf16.mxu0 %v1282_v3 }
 0x118   : > { %1219 = vmatmul.mubr.msk.bf16.gmra.mxu0 %vm833_vm0, %v1267_v59 }
 0x119   : > { %920 = vmatprep.mubr.bf16.mxu0 %v1282_v3 }
 0x11c   : > { %v1640_v7 = vpop.permute.xlu0 %780 }
 0x120   : > { %1220 = vmatmul.mubr.msk.bf16.gmra.mxu0 %vm833_vm0, %v1268_v52 }
 0x121   : > { %930 = vmatprep.mubr.bf16.mxu0 %v1282_v3 }
 0x127   : > { %v1646_v11 = vpop.permute.xlu1 %755 }
 0x128   : > { %1221 = vmatmul.mubr.msk.bf16.gmra.mxu0 %vm833_vm0, %v1269_v60 }
 0x129   : > { %940 = vmatprep.mubr.bf16.mxu0 %v1282_v3  ;;  %v1644_v9 = vpop.permute.xlu0 %770 }
 0x12b   : > { %v1650_v4 = vpop.permute.xlu1 %745 }
 0x12f   : > { %v1654_v13 = vpop.permute.xlu1 %735 }
 0x130   : > { %1222 = vmatmul.mubr.msk.bf16.gmra.mxu0 %vm833_vm0, %v1270_v63 }
 0x131   : > { %950 = vmatprep.mubr.bf16.mxu0 %v1282_v3 }
 0x133   : > { %v726_v16 = vpop.permute.xlu1 %725 }
 0x137   : > { %v716_v62 = vpop.permute.xlu1 %715 }
 0x138   : > { %1223 = vmatmul.mubr.msk.bf16.gmra.mxu0 %vm833_vm0, %v1271_v1 }
 0x139   : > { %960 = vmatprep.mubr.bf16.mxu0 %v1282_v3  ;;  %v1648_v3 = vpop.permute.xlu0 %760 }
 0x13d   : > { %v1652_v12 = vpop.permute.xlu0 %750 }
 0x140   : > { %1224 = vmatmul.mubr.msk.bf16.gmra.mxu0 %vm833_vm0, %v1272_v2 }
 0x141   : > { %v1656_v27 = vpop.permute.xlu0 %740 }
 0x145   : > { %v731_v17 = vpop.permute.xlu0 %730 }
 0x149   : > { %v721_v20 = vpop.permute.xlu0 %720 }
 0x1c8   : > { %v892_v18 = vpop.f32.mrf.mxu0 }
 0x1c9   : > { %v893_v19 = vadd.f32 %v892_v18, %v716_v62 }
 0x1ca   : > { %v894_v29 = vpop.f32.mrf.mxu0 }
 0x1cb   : > { %v895_v10 = vadd.f32 %v894_v29, %v716_v62  ;;  %v1003_v30 = vmul.f32 0.2, %v893_v19  ;;  %vm971_vm1 = vcmp.ge.f32.partialorder %v893_v19, 0.0 }
 0x1cc   : > { %v896_v26 = vpop.f32.mrf.mxu0 }
 0x1cd   : > { %v897_v34 = vadd.f32 %v896_v26, %v721_v20  ;;  %v1004_v41 = vmul.f32 0.2, %v895_v10  ;;  %vm972_vm3 = vcmp.ge.f32.partialorder %v895_v10, 0.0  ;;  %v1658_v43 = vsel %vm971_vm1, %v893_v19, %v1003_v30 }
 0x1ce   : > { %v898_v35 = vpop.f32.mrf.mxu0 }
 0x1cf   : > { %vm973_vm2 = vcmp.ge.f32.partialorder %v897_v34, 0.0  ;;  %v1005_v42 = vmul.f32 0.2, %v897_v34  ;;  %v899_v25 = vadd.f32 %v898_v35, %v721_v20  ;;  %v1664_v46 = vsel %vm972_vm3, %v895_v10, %v1004_v41 }
 0x1d0   : > { %v902_v33 = vpop.f32.mrf.mxu0 }
 0x1d1   : > { %vm974_vm4 = vcmp.ge.f32.partialorder %v899_v25, 0.0  ;;  %v1006_v44 = vmul.f32 0.2, %v899_v25  ;;  %v903_v48 = vadd.f32 %v902_v33, %v726_v16  ;;  %v1660_v40 = vsel %vm973_vm2, %v897_v34, %v1005_v42 }
 0x1d2   : > { %v904_v37 = vpop.f32.mrf.mxu0  ;;  %v1068_v38 = vpack.c.bf16 %v1660_v40, %v1658_v43 }
 0x1d3   : > { %v905_v45 = vadd.f32 %v904_v37, %v726_v16  ;;  %v1666_v24 = vsel %vm974_vm4, %v899_v25, %v1006_v44  ;;  %v1007_v23 = vmul.f32 0.2, %v903_v48  ;;  %vm975_vm5 = vcmp.ge.f32.partialorder %v903_v48, 0.0 }
 0x1d4   : > { %v906_v47 = vpop.f32.mrf.mxu0  ;;  %v1069_v22 = vpack.c.bf16 %v1666_v24, %v1664_v46 }
 0x1d5   : > { %v907_v36 = vadd.f32 %v906_v47, %v731_v17  ;;  %v1008_v32 = vmul.f32 0.2, %v905_v45  ;;  %vm976_vm7 = vcmp.ge.f32.partialorder %v905_v45, 0.0  ;;  %v1672_v53 = vsel %vm975_vm5, %v903_v48, %v1007_v23 }
 0x1d6   : > { %v908_v49 = vpop.f32.mrf.mxu0 }
 0x1d7   : > { %vm977_vm6 = vcmp.ge.f32.partialorder %v907_v36, 0.0  ;;  %v1009_v50 = vmul.f32 0.2, %v907_v36  ;;  %v909_v51 = vadd.f32 %v908_v49, %v731_v17  ;;  %v1678_v39 = vsel %vm976_vm7, %v905_v45, %v1008_v32 }
 0x1d8   : > { %v1670_v21 = vpop.f32.mrf.mxu0 }
 0x1d9   : > { %vm978_vm8 = vcmp.ge.f32.partialorder %v909_v51, 0.0  ;;  %v1010_v55 = vmul.f32 0.2, %v909_v51  ;;  %v1674_v54 = vsel %vm977_vm6, %v907_v36, %v1009_v50 }
 0x1da   : > { %v914_v56 = vpop.f32.mrf.mxu0  ;;  %v1070_v57 = vpack.c.bf16 %v1674_v54, %v1672_v53 }
 0x1db   : > { %v1680_v58 = vsel %vm978_vm8, %v909_v51, %v1010_v55  ;;  %v1693_v35 = vadd.f32 %v914_v56, %v1654_v13 }
 0x1dc   : > { %v916_v14 = vpop.f32.mrf.mxu0  ;;  %v1071_v61 = vpack.c.bf16 %v1680_v58, %v1678_v39  ;;  %v1285_v39 = vmov 1966171168  }
 0x1dd   : > { %v1697_v25 = vadd.f32 %v916_v14, %v1656_v27  ;;  %v1129_v58 = vunpack.c.l.s4 %v1285_v39 }
 0x1de   : > { %v1684_v0 = vpop.f32.mrf.mxu0 }
 0x1e0   : > { %v1686_v59 = vpop.f32.mrf.mxu0 }
 0x1e2   : > { %v924_v52 = vpop.f32.mrf.mxu0 }
 0x1e3   : > { %v1700_v33 = vadd.f32 %v924_v52, %v1650_v4 }
 0x1e4   : > { %v926_v60 = vpop.f32.mrf.mxu0 }
 0x1e5   : > { %v1703_v44 = vadd.f32 %v926_v60, %v1652_v12 }
 0x1e6   : > { %v1688_v63 = vpop.f32.mrf.mxu0 }
 0x1e8   : > { %v1690_v1 = vpop.f32.mrf.mxu0 }
 0x1ea   : > { %v934_v2 = vpop.f32.mrf.mxu0 }
 0x1eb   : > { %v1707_v37 = vadd.f32 %v934_v2, %v1646_v11 }
 0x1ec   : > { %v936_v16 = vpop.f32.mrf.mxu0 }
 0x1ed   : > { %v1710_v45 = vadd.f32 %v936_v16, %v1648_v3  ;;  %vm988_vm6 = vcmp.ge.f32.partialorder %v1707_v37, 0.0 }
 0x1ee   : > { %v938_v17 = vpop.f32.mrf.mxu0 }
 0x1ef   : > { %v1713_v47 = vadd.f32 %v938_v17, %v1648_v3  ;;  %vm989_vm7 = vcmp.ge.f32.partialorder %v1710_v45, 0.0 }
 0x1f0   : > { %v942_v62 = vpop.f32.mrf.mxu0 }
 0x1f1   : > { %v1717_v49 = vadd.f32 %v942_v62, %v1642_v8  ;;  %vm990_vm4 = vcmp.ge.f32.partialorder %v1713_v47, 0.0 }
 0x1f2   : > { %v944_v18 = vpop.f32.mrf.mxu0 }
 0x1f3   : > { %v945_v32 = vadd.f32 %v944_v18, %v1642_v8  ;;  %vm991_vm5 = vcmp.ge.f32.partialorder %v1717_v49, 0.0 }
 0x1f4   : > { %v946_v19 = vpop.f32.mrf.mxu0 }
 0x1f5   : > { %v947_v55 = vadd.f32 %v946_v19, %v1644_v9  ;;  %vm992_vm2 = vcmp.ge.f32.partialorder %v945_v32, 0.0 }
 0x1f6   : > { %v948_v29 = vpop.f32.mrf.mxu0 }
 0x1f7   : > { %v949_v56 = vadd.f32 %v948_v29, %v1644_v9  ;;  %vm993_vm3 = vcmp.ge.f32.partialorder %v947_v55, 0.0 }
 0x1f8   : > { %v952_v20 = vpop.f32.mrf.mxu0 }
 0x1f9   : > { %v953_v16 = vadd.f32 %v952_v20, %v1638_v6  ;;  %v1026_v18 = vmul.f32 0.2, %v949_v56  ;;  %vm994_vm0 = vcmp.ge.f32.partialorder %v949_v56, 0.0 }
 0x1fa   : > { %v954_v10 = vpop.f32.mrf.mxu0 }
 0x1fb   : > { %v955_v50 = vadd.f32 %v954_v10, %v1638_v6  ;;  %v1024_v6 = vmul.f32 0.2, %v945_v32  ;;  %vm995_vm1 = vcmp.ge.f32.partialorder %v953_v16, 0.0 }
 0x1fc   : > { %v956_v30 = vpop.f32.mrf.mxu0 }
 0x1fd   : > { %v957_v14 = vadd.f32 %v956_v30, %v1640_v7  ;;  %v1028_v17 = vmul.f32 0.2, %v955_v50  ;;  %vm996_vm14 = vcmp.ge.f32.partialorder %v955_v50, 0.0 }
 0x1fe   : > { %v958_v26 = vpop.f32.mrf.mxu0 }
 0x1ff   : > { %v959_v41 = vadd.f32 %v958_v26, %v1640_v7  ;;  %v1029_v9 = vmul.f32 0.2, %v957_v14  ;;  %vm997_vm15 = vcmp.ge.f32.partialorder %v957_v14, 0.0 }
 0x200   : > { %v962_v34 = vpop.f32.mrf.mxu0 }
 0x201   : > { %v963_v23 = vadd.f32 %v962_v34, %v1636_v15  ;;  %v1030_v3 = vmul.f32 0.2, %v959_v41  ;;  %vm998_vm10 = vcmp.ge.f32.partialorder %v959_v41, 0.0  ;;  %v1060_v34 = vsel %vm996_vm14, %v955_v50, %v1028_v17 }
 0x202   : > { %v964_v42 = vpop.f32.mrf.mxu0  ;;  %v1023_v50 = vmul.f32 0.2, %v1717_v49  ;;  %vm980_vm14 = vcmp.ge.f32.partialorder %v1693_v35, 0.0 }
 0x203   : > { %v965_v48 = vadd.f32 %v964_v42, %v1636_v15  ;;  %v1031_v8 = vmul.f32 0.2, %v963_v23  ;;  %vm999_vm13 = vcmp.ge.f32.partialorder %v963_v23, 0.0  ;;  %v1062_v10 = vsel %vm998_vm10, %v959_v41, %v1030_v3 }
 0x204   : > { %v966_v36 = vpop.f32.mrf.mxu0  ;;  %v1025_v42 = vmul.f32 0.2, %v947_v55  ;;  %v1058_v41 = vsel %vm994_vm0, %v949_v56, %v1026_v18  ;;  %v1021_v56 = vmul.f32 0.2, %v1710_v45  ;;  %vm984_vm10 = vcmp.ge.f32.partialorder %v1700_v33, 0.0 }
 0x205   : > { %v967_v51 = vadd.f32 %v966_v36, %v1634_v5  ;;  %v1032_v60 = vmul.f32 0.2, %v965_v48  ;;  %vm1000_vm11 = vcmp.ge.f32.partialorder %v965_v48, 0.0  ;;  %v1063_v26 = vsel %vm999_vm13, %v963_v23, %v1031_v8 }
 0x206   : > { %v968_v52 = vpop.f32.mrf.mxu0  ;;  %v1081_v36 = vpack.c.bf16 %v1062_v10, %v1060_v34  ;;  %v933_v23 = vadd.f32 %v1690_v1, %v1646_v11  ;;  %v1057_v11 = vsel %vm993_vm3, %v947_v55, %v1025_v42  ;;  %v919_v1 = vadd.f32 %v1684_v0, %v1656_v27 }
 0x207   : > { %v1033_v15 = vmul.f32 0.2, %v967_v51  ;;  %v969_v2 = vadd.f32 %v968_v52, %v1634_v5  ;;  %vm1001_vm9 = vcmp.ge.f32.partialorder %v967_v51, 0.0  ;;  %v1064_v19 = vsel %vm1000_vm11, %v965_v48, %v1032_v60 }
 0x208   : > { %v1027_v5 = vmul.f32 0.2, %v953_v16  ;;  %v1061_v52 = vsel %vm997_vm15, %v957_v14, %v1029_v9  ;;  %v1022_v48 = vmul.f32 0.2, %v1713_v47  ;;  %v1020_v14 = vmul.f32 0.2, %v1707_v37 }
 0x209   : > { %v1034_v62 = vmul.f32 0.2, %v969_v2  ;;  %vm1002_vm12 = vcmp.ge.f32.partialorder %v969_v2, 0.0  ;;  %v1065_v7 = vsel %vm1001_vm9, %v967_v51, %v1033_v15  ;;  %v929_v51 = vadd.f32 %v1688_v63, %v1652_v12 }
 0x20a   : > { %v1082_v20 = vpack.c.bf16 %v1065_v7, %v1063_v26  ;;  %v1059_v3 = vsel %vm995_vm1, %v953_v16, %v1027_v5  ;;  %v1056_v63 = vsel %vm992_vm2, %v945_v32, %v1024_v6  ;;  %v923_v32 = vadd.f32 %v1686_v59, %v1650_v4 }
 0x20b   : > { %v1066_v29 = vsel %vm1002_vm12, %v969_v2, %v1034_v62  ;;  %v1080_v12 = vpack.c.bf16 %v1061_v52, %v1059_v3  ;;  %v1079_v60 = vpack.c.bf16 %v1058_v41, %v1056_v63  ;;  %v1018_v15 = vmul.f32 0.2, %v929_v51 }
 0x20c   : > { %v1083_v30 = vpack.c.bf16 %v1066_v29, %v1064_v19  ;;  %v1054_v2 = vsel %vm990_vm4, %v1713_v47, %v1022_v48  ;;  %vm986_vm8 = vcmp.ge.f32.partialorder %v929_v51, 0.0  ;;  %v1019_v16 = vmul.f32 0.2, %v933_v23 }
 0x20d   : > { %v1055_v55 = vsel %vm991_vm5, %v1717_v49, %v1023_v50  ;;  %v1016_v27 = vmul.f32 0.2, %v1700_v33  ;;  %vm987_vm9 = vcmp.ge.f32.partialorder %v933_v23, 0.0  ;;  %v1052_v8 = vsel %vm988_vm6, %v1707_v37, %v1020_v14 }
 0x20e   : > { %1084 = vmatprep.subr.bf16.mxu1 %v1083_v30  ;;  %v1078_v0 = vpack.c.bf16 %v1057_v11, %v1055_v55  ;;  %v1017_v47 = vmul.f32 0.2, %v1703_v44  ;;  %v1077_v4 = vpack.c.bf16 %v1054_v2, %v1052_v8  ;;  %v1053_v59 = vsel %vm989_vm7, %v1710_v45, %v1021_v56 }
 0x20f   : > { %1085 = vmatpush1.bf16.msra.mxu1 %v1082_v20  ;;  %v1014_v17 = vmul.f32 0.2, %v919_v1  ;;  %vm985_vm11 = vcmp.ge.f32.partialorder %v1703_v44, 0.0  ;;  %v1050_v49 = vsel %vm986_vm8, %v929_v51, %v1018_v15  ;;  %v913_v62 = vadd.f32 %v1670_v21, %v1654_v13 }
 0x210   : > { %1086 = vmatprep.subr.bf16.mxu1 %v1081_v36  ;;  %vm982_vm12 = vcmp.ge.f32.partialorder %v919_v1, 0.0  ;;  %v1015_v18 = vmul.f32 0.2, %v923_v32  ;;  %v1051_v9 = vsel %vm987_vm9, %v933_v23, %v1019_v16  ;;  %v1012_v37 = vmul.f32 0.2, %v1693_v35 }
 0x211   : > { %vm983_vm13 = vcmp.ge.f32.partialorder %v923_v32, 0.0  ;;  %v1076_v7 = vpack.c.bf16 %v1053_v59, %v1051_v9  ;;  %v1048_v45 = vsel %vm984_vm10, %v1700_v33, %v1016_v27  ;;  %v1013_v19 = vmul.f32 0.2, %v1697_v25 }
 0x212   : > { %v1075_v29 = vpack.c.bf16 %v1050_v49, %v1048_v45  ;;  %v1049_v10 = vsel %vm985_vm11, %v1703_v44, %v1017_v47  ;;  %vm981_vm15 = vcmp.ge.f32.partialorder %v1697_v25, 0.0  ;;  %v1046_v13 = vsel %vm982_vm12, %v919_v1, %v1014_v17 }
 0x213   : > { %1087 = vmatpush1.bf16.msra.mxu1 %v1080_v12  ;;  %v1011_v21 = vmul.f32 0.2, %v913_v62  ;;  %v1047_v5 = vsel %vm983_vm13, %v923_v32, %v1015_v18  ;;  %vm979_vm0 = vcmp.ge.f32.partialorder %v913_v62, 0.0  ;;  %v1044_v26 = vsel %vm980_vm14, %v1693_v35, %v1012_v37  ;;  %v1067_v35 = vld [vmem:[%s1802_s5] sm:$0x1] }
 0x214   : > { %1088 = vmatprep.subr.bf16.mxu1 %v1079_v60  ;;  %v1074_v30 = vpack.c.bf16 %v1049_v10, %v1047_v5  ;;  %v1073_v6 = vpack.c.bf16 %v1046_v13, %v1044_v26  ;;  %v1045_v33 = vsel %vm981_vm15, %v1697_v25, %v1013_v19  ;;  %vm1145_vm1 = vcmp.lt.s32.totalorder %v312_v28, 256 }
 0x215   : > { %v1043_v20 = vsel %vm979_vm0, %v913_v62, %v1011_v21 }
 0x216   : > { %v1072_v34 = vpack.c.bf16 %v1045_v33, %v1043_v20 }
 0x217   : > { %1089 = vmatpush1.bf16.msra.mxu1 %v1078_v0 }
 0x218   : > { %1090 = vmatprep.subr.bf16.mxu1 %v1077_v4 }
 0x21b   : > { %1091 = vmatpush1.bf16.msra.mxu1 %v1076_v7 }
 0x21c   : > { %1092 = vmatprep.subr.bf16.mxu1 %v1075_v29 }
 0x21f   : > { %1093 = vmatpush1.bf16.msra.mxu1 %v1074_v30 }
 0x220   : > { %1094 = vmatprep.subr.bf16.mxu1 %v1073_v6 }
 0x223   : > { %1095 = vmatpush1.bf16.msra.mxu1 %v1072_v34 }
 0x224   : > { %1096 = vmatprep.subr.bf16.mxu1 %v1071_v61  ;;  %v1130_v61 = vunpack.c.0.s8 %v1129_v58 }
 0x226   : > { %v1133_v53 = vsub.s32 %v1130_v61, %v1408_v31 }
 0x227   : > { %1097 = vmatpush1.bf16.msra.mxu1 %v1070_v57 }
 0x228   : > { %1098 = vmatprep.subr.bf16.mxu1 %v1069_v22 }
 0x22b   : > { %1099 = vmatpush1.bf16.msra.mxu1 %v1068_v38 }
 0x22e   : > { %1117 = vmatmul.mubr.bf16.vlgmr.msra.gmra.mxu1 %v1067_v35 }
 0x2ee   : > { %v1118_v25 = vpop.f32.mrf.mxu1 }
 0x2f0   : > { %v1120_v54 = vpop.f32.mrf.mxu1 }
 0x2f1   : > { %v1127_v57 = vcombine.low %v1118_v25, %v1120_v54 }
 0x2f2   : > { %v1122_v44 = vpop.f32.mrf.mxu1 }
 0x2f3   : > { %v1134_v46 = vrot.slane %v1127_v57, %v1133_v53 }
 0x2f4   : > { %v1123_v43 = vpop.f32.mrf.mxu1 }
 0x2f5   : > { %v1141_v40 = vrot.slane %v1134_v46, %v1133_v53 }
 0x2f7   : > { %1147 = vst.msk [vmem:[%s251_s23] sm:$0x3] %vm1145_vm1, %v1141_v40 }
 0x2f8 PF: > { %s16_s21 = sadd.s32 1, %s1279_s21  }
 0x2f9   : > { %p13_p4 = scmp.ge.s32.totalorder %s16_s21, 4  }
 0x2fb   :  { %15 = sbr.rel (!%p13_p4) target bundleno = 1 (0x1), region = 77 }

</bundles_post_ra>
